<compile_context>
chip_gen: v5e
topology: v5e:2x2
jax: 0.10.0
libtpu: 0.0.40
codegen_flags: <defaults>
</compile_context>

<pallas_src>
import math
import functools

import jax
import jax.numpy as jnp
from jax.experimental import pallas as pl
from jax.experimental.pallas import tpu as pltpu


def mhsa_kernel(x_ref, wqkv_ref, bqkv_ref, wo_ref, bo_ref, o_ref, *,
                num_heads, head_dim, block_b, seq_len, attn_dtype):
    Bt, N = block_b, seq_len
    C = num_heads * head_dim
    cdtype = attn_dtype if attn_dtype is not None else x_ref.dtype

    # ---- Fused QKV projection: one (Bt*N, C) x (C, 3C) MXU matmul. ----
    x2d = x_ref[...].reshape(Bt * N, C)
    qkv = jnp.dot(x2d, wqkv_ref[...], preferred_element_type=jnp.float32)
    qkv = qkv + bqkv_ref[...]

    # Fold the 1/sqrt(head_dim) scale into q once (N*C mults, not N*N/head).
    scale = 1.0 / math.sqrt(head_dim)
    q_all = (qkv[:, 0 * C:1 * C] * scale).astype(cdtype).reshape(Bt, N, C)
    k_all = qkv[:, 1 * C:2 * C].astype(cdtype).reshape(Bt, N, C)
    v_all = qkv[:, 2 * C:3 * C].astype(cdtype).reshape(Bt, N, C)

    wo = wo_ref[...]

    # Per-head attention, batched over the Bt sequences (single batch dim in
    # the dot_general -> same pattern as the flash-attention reference).
    # Head outputs never touch a scratch slab: each head's context is folded
    # into the output projection via the matching wo row-slice and accumulated
    # in f32 (maps onto MRB in-place accumulation on v7x).
    out = jnp.zeros((Bt * N, C), jnp.float32)
    for h in range(num_heads):                 # static, small trip count
        c0, c1 = h * head_dim, (h + 1) * head_dim
        q_h = q_all[:, :, c0:c1]               # (Bt, N, hd)
        k_h = k_all[:, :, c0:c1]
        v_h = v_all[:, :, c0:c1]

        scores = jnp.einsum("bnd,bmd->bnm", q_h, k_h,
                            preferred_element_type=jnp.float32)   # (Bt, N, N)
        m = jnp.max(scores, axis=-1, keepdims=True)
        e = jnp.exp(scores - m)
        denom = jnp.sum(e, axis=-1, keepdims=True)
        probs = e * pl.reciprocal(denom, approx=True)
        # TODO(synk): attention dropout omitted (dropout=0.0 -> identity).

        ctx = jnp.einsum("bnm,bmd->bnd", probs.astype(cdtype), v_h,
                         preferred_element_type=jnp.float32)      # (Bt, N, hd)
        out = out + jnp.dot(ctx.reshape(Bt * N, head_dim).astype(cdtype),
                            wo[c0:c1, :],
                            preferred_element_type=jnp.float32)

    out = out + bo_ref[...]
    o_ref[...] = out.reshape(Bt, N, C).astype(o_ref.dtype)


def _tpu_vmem_capacity_bytes():
    """Physical VMEM per TensorCore; conservative 64 MiB if unqueryable."""
    try:
        return int(pltpu.get_tpu_info().vmem_capacity_bytes)
    except Exception:
        return 64 * 1024 * 1024


def _pick_block_b(B, N, C, itemsize, target_rows, vmem_budget, min_grid=1):
    """Largest divisor Bt of B such that Bt*N rows fill the MXU M-dim without
    blowing the VMEM budget, while keeping at least `min_grid` grid steps."""
    def est(bt):
        rows = bt * N
        io = 4 * rows * C * itemsize           # x + out tiles, double-buffered
        qkv_f32 = rows * 3 * C * 4             # f32 qkv intermediate
        qkv_cast = rows * 3 * C * itemsize     # casted q/k/v copies
        acc = rows * C * 4                     # f32 output accumulator
        scores = 2 * bt * N * N * 4            # scores + exp (one head live)
        return io + qkv_f32 + qkv_cast + acc + scores

    best = 1
    for bt in range(1, B + 1):
        if B % bt:
            continue
        if bt * N > max(target_rows, N):
            continue
        if (B // bt) < min_grid:
            continue
        if est(bt) > vmem_budget:
            continue
        best = bt
    return best


def multi_head_self_attention(x, params, num_heads, block_b=None,
                              attn_dtype=None):
    B, N, C = x.shape
    head_dim = C // num_heads
    wq, bq, wk, bk, wv, bv, wo, bo = params

    # Host-side fusion of the three projections into a single matmul operand.
    wqkv = jnp.concatenate([wq, wk, wv], axis=1)      # (C, 3C)
    bqkv = jnp.concatenate([bq, bk, bv], axis=1)      # (1, 3C)

    itemsize = jnp.dtype(x.dtype).itemsize
    vmem_cap = _tpu_vmem_capacity_bytes()
    small_vmem = vmem_cap <= 64 * 1024 * 1024         # v7x-class TensorCore
    vmem_limit = min((vmem_cap * 3) // 4, 100 * 1024 * 1024)
    target_rows = 512 if small_vmem else 1024
    # v7x has 2 TensorCores/chip: keep >=2 steps on the "parallel" batch axis
    # so both cores get work.  v5e/v6e (1 TC): prefer the biggest block.
    min_grid = 2 if (small_vmem and B >= 2) else 1

    weight_bytes = (C * 3 * C + C * C + 4 * C) * itemsize
    block_budget = max(int(vmem_limit * 0.7) - weight_bytes, 1)

    if block_b is None:
        block_b = _pick_block_b(B, N, C, itemsize, target_rows, block_budget,
                                min_grid)
    grid_b = B // block_b

    kernel = functools.partial(
        mhsa_kernel, num_heads=num_heads, head_dim=head_dim,
        block_b=block_b, seq_len=N, attn_dtype=attn_dtype)

    x_spec = pl.BlockSpec((block_b, N, C), lambda b: (b, 0, 0))

    def call(single_buffer_weights):
        wkw = ({"pipeline_mode": pl.Buffered(1)}
               if single_buffer_weights else {})
        wqkv_spec = pl.BlockSpec((C, 3 * C), lambda b: (0, 0), **wkw)
        bqkv_spec = pl.BlockSpec((1, 3 * C), lambda b: (0, 0), **wkw)
        wo_spec = pl.BlockSpec((C, C), lambda b: (0, 0), **wkw)
        bo_spec = pl.BlockSpec((1, C), lambda b: (0, 0), **wkw)
        return pl.pallas_call(
            kernel,
            out_shape=jax.ShapeDtypeStruct((B, N, C), x.dtype),
            grid_spec=pltpu.PrefetchScalarGridSpec(
                num_scalar_prefetch=0,
                grid=(grid_b,),
                in_specs=[x_spec, wqkv_spec, bqkv_spec, wo_spec, bo_spec],
                out_specs=x_spec,
            ),
            compiler_params=pltpu.CompilerParams(
                dimension_semantics=("parallel",),
                vmem_limit_bytes=int(vmem_limit)),
        )(x, wqkv, bqkv, wo, bo)

    try:
        # Constant-index_map weights: single-buffer them (halves their VMEM).
        return call(True)
    except Exception:
        # pipeline_mode=Buffered(1) unsupported on this JAX build; fall back
        # to default double-buffered weights (correct, just more VMEM).
        return call(False)


def reference_mhsa(x, params, num_heads):
    """Pure-JAX reference mirroring the PyTorch forward."""
    B, N, C = x.shape
    head_dim = C // num_heads
    wq, bq, wk, bk, wv, bv, wo, bo = params

    def proj(t, w, b):
        return t @ w + b

    def split_heads(t):
        return t.reshape(B, N, num_heads, head_dim).transpose(0, 2, 1, 3)

    q = split_heads(proj(x, wq, bq))
    k = split_heads(proj(x, wk, bk))
    v = split_heads(proj(x, wv, bv))

    scores = jnp.einsum("bhnd,bhmd->bhnm", q, k) / math.sqrt(head_dim)
    probs = jax.nn.softmax(scores, axis=-1)
    out = jnp.einsum("bhnm,bhmd->bhnd", probs, v)
    out = out.transpose(0, 2, 1, 3).reshape(B, N, C)
    return out @ wo + bo


def _run_case(key, B, N, C, num_heads):
    keys = jax.random.split(key, 9)
    bound = 1.0 / math.sqrt(C)

    def init_w(k):
        return jax.random.uniform(k, (C, C), jnp.float32, -bound, bound)

    def init_b(k):
        return jax.random.uniform(k, (1, C), jnp.float32, -bound, bound)

    wq, wk, wv, wo = (init_w(keys[i]) for i in range(4))
    bq, bk, bv, bo = (init_b(keys[4 + i]) for i in range(4))
    params = (wq, bq, wk, bk, wv, bv, wo, bo)

    x = jax.random.normal(keys[8], (B, N, C), jnp.float32)

    out = jax.block_until_ready(multi_head_self_attention(x, params, num_heads))
    ref = reference_mhsa(x, params, num_heads)
    assert out.shape == (B, N, C)
    # Tolerance accounts for the approx (EUP) reciprocal in the softmax.
    assert jnp.allclose(out, ref, atol=2e-3, rtol=2e-3), "mismatch vs reference"


if __name__ == "__main__":
    root = jax.random.PRNGKey(0)
    k1, k2 = jax.random.split(root)
    _run_case(k1, B=2, N=8, C=32, num_heads=4)     # tiny smoke test
    _run_case(k2, B=4, N=16, C=256, num_heads=4)   # lane-aligned case (C % 128 == 0)
    print("KERNEL_OK")
</pallas_src>

<mosaic_0001>
module attributes {stable_mosaic.version = 11 : i64} {
  func.func @mhsa_kernel(%arg0: i32, %arg1: memref<1x8x32xf32, #tpu.memory_space<vmem>>, %arg2: memref<32x96xf32, #tpu.memory_space<vmem>>, %arg3: memref<1x96xf32, #tpu.memory_space<vmem>>, %arg4: memref<32x32xf32, #tpu.memory_space<vmem>>, %arg5: memref<1x32xf32, #tpu.memory_space<vmem>>, %arg6: memref<1x8x32xf32, #tpu.memory_space<vmem>>) attributes {dimension_semantics = [#tpu.dimension_semantics<parallel>], iteration_bounds = array<i64: 2>, scalar_prefetch = 0 : i64, scratch_operands = 0 : i64, tpu.core_type = #tpu.core_type<tc>, window_params = [{transform_indices = @transform_0, window_bounds = array<i64: 1, 8, 32>}, {pipeline_mode = #tpu.pipeline_mode<synchronous>, transform_indices = @transform_1, window_bounds = array<i64: 32, 96>}, {pipeline_mode = #tpu.pipeline_mode<synchronous>, transform_indices = @transform_2, window_bounds = array<i64: 1, 96>}, {pipeline_mode = #tpu.pipeline_mode<synchronous>, transform_indices = @transform_3, window_bounds = array<i64: 32, 32>}, {pipeline_mode = #tpu.pipeline_mode<synchronous>, transform_indices = @transform_4, window_bounds = array<i64: 1, 32>}, {transform_indices = @transform_5, window_bounds = array<i64: 1, 8, 32>}]} {
    %c0 = arith.constant 0 : index
    %c0_0 = arith.constant 0 : index
    %c0_1 = arith.constant 0 : index
    %0 = vector.load %arg1[%c0, %c0_0, %c0_1] : memref<1x8x32xf32, #tpu.memory_space<vmem>>, vector<1x8x32xf32>
    %1 = vector.shape_cast %0 : vector<1x8x32xf32> to vector<8x32xf32>
    %c0_2 = arith.constant 0 : index
    %c0_3 = arith.constant 0 : index
    %2 = vector.load %arg2[%c0_2, %c0_3] : memref<32x96xf32, #tpu.memory_space<vmem>>, vector<32x96xf32>
    %cst = arith.constant dense<0.000000e+00> : vector<8x96xf32>
    %3 = tpu.matmul %1, %2, %cst {dimension_numbers = #tpu.dot_dimension_numbers<[1], [0], [0], [1], [0, 0, 1, 1], [], []>} : vector<8x32xf32>, vector<32x96xf32>, vector<8x96xf32> -> vector<8x96xf32>
    %c0_4 = arith.constant 0 : index
    %c0_5 = arith.constant 0 : index
    %4 = vector.load %arg3[%c0_4, %c0_5] : memref<1x96xf32, #tpu.memory_space<vmem>>, vector<1x96xf32>
    %5 = vector.broadcast %4 : vector<1x96xf32> to vector<8x96xf32>
    %6 = arith.addf %3, %5 : vector<8x96xf32>
    %7 = vector.extract_strided_slice %6 {offsets = [0, 0], sizes = [8, 32], strides = [1, 1]} : vector<8x96xf32> to vector<8x32xf32>
    %cst_6 = arith.constant 0.353553385 : f32
    %8 = vector.broadcast %cst_6 : f32 to vector<8x32xf32>
    %9 = arith.mulf %7, %8 : vector<8x32xf32>
    %10 = vector.shape_cast %9 : vector<8x32xf32> to vector<1x8x32xf32>
    %11 = vector.extract_strided_slice %6 {offsets = [0, 32], sizes = [8, 32], strides = [1, 1]} : vector<8x96xf32> to vector<8x32xf32>
    %12 = vector.shape_cast %11 : vector<8x32xf32> to vector<1x8x32xf32>
    %13 = vector.extract_strided_slice %6 {offsets = [0, 64], sizes = [8, 32], strides = [1, 1]} : vector<8x96xf32> to vector<8x32xf32>
    %14 = vector.shape_cast %13 : vector<8x32xf32> to vector<1x8x32xf32>
    %c0_7 = arith.constant 0 : index
    %c0_8 = arith.constant 0 : index
    %15 = vector.load %arg4[%c0_7, %c0_8] : memref<32x32xf32, #tpu.memory_space<vmem>>, vector<32x32xf32>
    %cst_9 = arith.constant 0.000000e+00 : f32
    %16 = vector.broadcast %cst_9 : f32 to vector<8x32xf32>
    %17 = vector.extract_strided_slice %10 {offsets = [0, 0, 0], sizes = [1, 8, 8], strides = [1, 1, 1]} : vector<1x8x32xf32> to vector<1x8x8xf32>
    %18 = vector.extract_strided_slice %12 {offsets = [0, 0, 0], sizes = [1, 8, 8], strides = [1, 1, 1]} : vector<1x8x32xf32> to vector<1x8x8xf32>
    %19 = vector.extract_strided_slice %14 {offsets = [0, 0, 0], sizes = [1, 8, 8], strides = [1, 1, 1]} : vector<1x8x32xf32> to vector<1x8x8xf32>
    "tpu.trace_start"() <{level = 10 : i32, message = "bnd,bmd->bnm"}> : () -> ()
    %cst_10 = arith.constant dense<0.000000e+00> : vector<1x8x8xf32>
    %20 = tpu.matmul %17, %18, %cst_10 {dimension_numbers = #tpu.dot_dimension_numbers<[2], [2], [1], [1], [0, 0, 0, 1, 1, 1], [0], [0]>} : vector<1x8x8xf32>, vector<1x8x8xf32>, vector<1x8x8xf32> -> vector<1x8x8xf32>
    "tpu.trace_stop"() : () -> ()
    %cst_11 = arith.constant dense<0xFF800000> : vector<1x8xf32>
    %21 = vector.multi_reduction <maximumf>, %20, %cst_11 [2] : vector<1x8x8xf32> to vector<1x8xf32>
    %22 = vector.shape_cast %21 : vector<1x8xf32> to vector<1x8x1xf32>
    %23 = vector.broadcast %22 : vector<1x8x1xf32> to vector<1x8x8xf32>
    %24 = arith.subf %20, %23 : vector<1x8x8xf32>
    %25 = math.exp %24 : vector<1x8x8xf32>
    %cst_12 = arith.constant dense<0.000000e+00> : vector<1x8xf32>
    %26 = vector.multi_reduction <add>, %25, %cst_12 [2] : vector<1x8x8xf32> to vector<1x8xf32>
    %27 = vector.shape_cast %26 : vector<1x8xf32> to vector<1x8x1xf32>
    %28 = tpu.reciprocal %27 {approx = true} : vector<1x8x1xf32> -> vector<1x8x1xf32>
    %29 = vector.broadcast %28 : vector<1x8x1xf32> to vector<1x8x8xf32>
    %30 = arith.mulf %25, %29 : vector<1x8x8xf32>
    "tpu.trace_start"() <{level = 10 : i32, message = "bnm,bmd->bnd"}> : () -> ()
    %cst_13 = arith.constant dense<0.000000e+00> : vector<1x8x8xf32>
    %31 = tpu.matmul %30, %19, %cst_13 {dimension_numbers = #tpu.dot_dimension_numbers<[2], [1], [1], [2], [0, 0, 0, 1, 1, 2], [0], [0]>} : vector<1x8x8xf32>, vector<1x8x8xf32>, vector<1x8x8xf32> -> vector<1x8x8xf32>
    "tpu.trace_stop"() : () -> ()
    %32 = vector.shape_cast %31 : vector<1x8x8xf32> to vector<8x8xf32>
    %33 = vector.extract_strided_slice %15 {offsets = [0, 0], sizes = [8, 32], strides = [1, 1]} : vector<32x32xf32> to vector<8x32xf32>
    %cst_14 = arith.constant dense<0.000000e+00> : vector<8x32xf32>
    %34 = tpu.matmul %32, %33, %cst_14 {dimension_numbers = #tpu.dot_dimension_numbers<[1], [0], [0], [1], [0, 0, 1, 1], [], []>} : vector<8x8xf32>, vector<8x32xf32>, vector<8x32xf32> -> vector<8x32xf32>
    %35 = arith.addf %16, %34 : vector<8x32xf32>
    %36 = vector.extract_strided_slice %10 {offsets = [0, 0, 8], sizes = [1, 8, 8], strides = [1, 1, 1]} : vector<1x8x32xf32> to vector<1x8x8xf32>
    %37 = vector.extract_strided_slice %12 {offsets = [0, 0, 8], sizes = [1, 8, 8], strides = [1, 1, 1]} : vector<1x8x32xf32> to vector<1x8x8xf32>
    %38 = vector.extract_strided_slice %14 {offsets = [0, 0, 8], sizes = [1, 8, 8], strides = [1, 1, 1]} : vector<1x8x32xf32> to vector<1x8x8xf32>
    "tpu.trace_start"() <{level = 10 : i32, message = "bnd,bmd->bnm"}> : () -> ()
    %cst_15 = arith.constant dense<0.000000e+00> : vector<1x8x8xf32>
    %39 = tpu.matmul %36, %37, %cst_15 {dimension_numbers = #tpu.dot_dimension_numbers<[2], [2], [1], [1], [0, 0, 0, 1, 1, 1], [0], [0]>} : vector<1x8x8xf32>, vector<1x8x8xf32>, vector<1x8x8xf32> -> vector<1x8x8xf32>
    "tpu.trace_stop"() : () -> ()
    %cst_16 = arith.constant dense<0xFF800000> : vector<1x8xf32>
    %40 = vector.multi_reduction <maximumf>, %39, %cst_16 [2] : vector<1x8x8xf32> to vector<1x8xf32>
    %41 = vector.shape_cast %40 : vector<1x8xf32> to vector<1x8x1xf32>
    %42 = vector.broadcast %41 : vector<1x8x1xf32> to vector<1x8x8xf32>
    %43 = arith.subf %39, %42 : vector<1x8x8xf32>
    %44 = math.exp %43 : vector<1x8x8xf32>
    %cst_17 = arith.constant dense<0.000000e+00> : vector<1x8xf32>
    %45 = vector.multi_reduction <add>, %44, %cst_17 [2] : vector<1x8x8xf32> to vector<1x8xf32>
    %46 = vector.shape_cast %45 : vector<1x8xf32> to vector<1x8x1xf32>
    %47 = tpu.reciprocal %46 {approx = true} : vector<1x8x1xf32> -> vector<1x8x1xf32>
    %48 = vector.broadcast %47 : vector<1x8x1xf32> to vector<1x8x8xf32>
    %49 = arith.mulf %44, %48 : vector<1x8x8xf32>
    "tpu.trace_start"() <{level = 10 : i32, message = "bnm,bmd->bnd"}> : () -> ()
    %cst_18 = arith.constant dense<0.000000e+00> : vector<1x8x8xf32>
    %50 = tpu.matmul %49, %38, %cst_18 {dimension_numbers = #tpu.dot_dimension_numbers<[2], [1], [1], [2], [0, 0, 0, 1, 1, 2], [0], [0]>} : vector<1x8x8xf32>, vector<1x8x8xf32>, vector<1x8x8xf32> -> vector<1x8x8xf32>
    "tpu.trace_stop"() : () -> ()
    %51 = vector.shape_cast %50 : vector<1x8x8xf32> to vector<8x8xf32>
    %52 = vector.extract_strided_slice %15 {offsets = [8, 0], sizes = [8, 32], strides = [1, 1]} : vector<32x32xf32> to vector<8x32xf32>
    %cst_19 = arith.constant dense<0.000000e+00> : vector<8x32xf32>
    %53 = tpu.matmul %51, %52, %cst_19 {dimension_numbers = #tpu.dot_dimension_numbers<[1], [0], [0], [1], [0, 0, 1, 1], [], []>} : vector<8x8xf32>, vector<8x32xf32>, vector<8x32xf32> -> vector<8x32xf32>
    %54 = arith.addf %35, %53 : vector<8x32xf32>
    %55 = vector.extract_strided_slice %10 {offsets = [0, 0, 16], sizes = [1, 8, 8], strides = [1, 1, 1]} : vector<1x8x32xf32> to vector<1x8x8xf32>
    %56 = vector.extract_strided_slice %12 {offsets = [0, 0, 16], sizes = [1, 8, 8], strides = [1, 1, 1]} : vector<1x8x32xf32> to vector<1x8x8xf32>
    %57 = vector.extract_strided_slice %14 {offsets = [0, 0, 16], sizes = [1, 8, 8], strides = [1, 1, 1]} : vector<1x8x32xf32> to vector<1x8x8xf32>
    "tpu.trace_start"() <{level = 10 : i32, message = "bnd,bmd->bnm"}> : () -> ()
    %cst_20 = arith.constant dense<0.000000e+00> : vector<1x8x8xf32>
    %58 = tpu.matmul %55, %56, %cst_20 {dimension_numbers = #tpu.dot_dimension_numbers<[2], [2], [1], [1], [0, 0, 0, 1, 1, 1], [0], [0]>} : vector<1x8x8xf32>, vector<1x8x8xf32>, vector<1x8x8xf32> -> vector<1x8x8xf32>
    "tpu.trace_stop"() : () -> ()
    %cst_21 = arith.constant dense<0xFF800000> : vector<1x8xf32>
    %59 = vector.multi_reduction <maximumf>, %58, %cst_21 [2] : vector<1x8x8xf32> to vector<1x8xf32>
    %60 = vector.shape_cast %59 : vector<1x8xf32> to vector<1x8x1xf32>
    %61 = vector.broadcast %60 : vector<1x8x1xf32> to vector<1x8x8xf32>
    %62 = arith.subf %58, %61 : vector<1x8x8xf32>
    %63 = math.exp %62 : vector<1x8x8xf32>
    %cst_22 = arith.constant dense<0.000000e+00> : vector<1x8xf32>
    %64 = vector.multi_reduction <add>, %63, %cst_22 [2] : vector<1x8x8xf32> to vector<1x8xf32>
    %65 = vector.shape_cast %64 : vector<1x8xf32> to vector<1x8x1xf32>
    %66 = tpu.reciprocal %65 {approx = true} : vector<1x8x1xf32> -> vector<1x8x1xf32>
    %67 = vector.broadcast %66 : vector<1x8x1xf32> to vector<1x8x8xf32>
    %68 = arith.mulf %63, %67 : vector<1x8x8xf32>
    "tpu.trace_start"() <{level = 10 : i32, message = "bnm,bmd->bnd"}> : () -> ()
    %cst_23 = arith.constant dense<0.000000e+00> : vector<1x8x8xf32>
    %69 = tpu.matmul %68, %57, %cst_23 {dimension_numbers = #tpu.dot_dimension_numbers<[2], [1], [1], [2], [0, 0, 0, 1, 1, 2], [0], [0]>} : vector<1x8x8xf32>, vector<1x8x8xf32>, vector<1x8x8xf32> -> vector<1x8x8xf32>
    "tpu.trace_stop"() : () -> ()
    %70 = vector.shape_cast %69 : vector<1x8x8xf32> to vector<8x8xf32>
    %71 = vector.extract_strided_slice %15 {offsets = [16, 0], sizes = [8, 32], strides = [1, 1]} : vector<32x32xf32> to vector<8x32xf32>
    %cst_24 = arith.constant dense<0.000000e+00> : vector<8x32xf32>
    %72 = tpu.matmul %70, %71, %cst_24 {dimension_numbers = #tpu.dot_dimension_numbers<[1], [0], [0], [1], [0, 0, 1, 1], [], []>} : vector<8x8xf32>, vector<8x32xf32>, vector<8x32xf32> -> vector<8x32xf32>
    %73 = arith.addf %54, %72 : vector<8x32xf32>
    %74 = vector.extract_strided_slice %10 {offsets = [0, 0, 24], sizes = [1, 8, 8], strides = [1, 1, 1]} : vector<1x8x32xf32> to vector<1x8x8xf32>
    %75 = vector.extract_strided_slice %12 {offsets = [0, 0, 24], sizes = [1, 8, 8], strides = [1, 1, 1]} : vector<1x8x32xf32> to vector<1x8x8xf32>
    %76 = vector.extract_strided_slice %14 {offsets = [0, 0, 24], sizes = [1, 8, 8], strides = [1, 1, 1]} : vector<1x8x32xf32> to vector<1x8x8xf32>
    "tpu.trace_start"() <{level = 10 : i32, message = "bnd,bmd->bnm"}> : () -> ()
    %cst_25 = arith.constant dense<0.000000e+00> : vector<1x8x8xf32>
    %77 = tpu.matmul %74, %75, %cst_25 {dimension_numbers = #tpu.dot_dimension_numbers<[2], [2], [1], [1], [0, 0, 0, 1, 1, 1], [0], [0]>} : vector<1x8x8xf32>, vector<1x8x8xf32>, vector<1x8x8xf32> -> vector<1x8x8xf32>
    "tpu.trace_stop"() : () -> ()
    %cst_26 = arith.constant dense<0xFF800000> : vector<1x8xf32>
    %78 = vector.multi_reduction <maximumf>, %77, %cst_26 [2] : vector<1x8x8xf32> to vector<1x8xf32>
    %79 = vector.shape_cast %78 : vector<1x8xf32> to vector<1x8x1xf32>
    %80 = vector.broadcast %79 : vector<1x8x1xf32> to vector<1x8x8xf32>
    %81 = arith.subf %77, %80 : vector<1x8x8xf32>
    %82 = math.exp %81 : vector<1x8x8xf32>
    %cst_27 = arith.constant dense<0.000000e+00> : vector<1x8xf32>
    %83 = vector.multi_reduction <add>, %82, %cst_27 [2] : vector<1x8x8xf32> to vector<1x8xf32>
    %84 = vector.shape_cast %83 : vector<1x8xf32> to vector<1x8x1xf32>
    %85 = tpu.reciprocal %84 {approx = true} : vector<1x8x1xf32> -> vector<1x8x1xf32>
    %86 = vector.broadcast %85 : vector<1x8x1xf32> to vector<1x8x8xf32>
    %87 = arith.mulf %82, %86 : vector<1x8x8xf32>
    "tpu.trace_start"() <{level = 10 : i32, message = "bnm,bmd->bnd"}> : () -> ()
    %cst_28 = arith.constant dense<0.000000e+00> : vector<1x8x8xf32>
    %88 = tpu.matmul %87, %76, %cst_28 {dimension_numbers = #tpu.dot_dimension_numbers<[2], [1], [1], [2], [0, 0, 0, 1, 1, 2], [0], [0]>} : vector<1x8x8xf32>, vector<1x8x8xf32>, vector<1x8x8xf32> -> vector<1x8x8xf32>
    "tpu.trace_stop"() : () -> ()
    %89 = vector.shape_cast %88 : vector<1x8x8xf32> to vector<8x8xf32>
    %90 = vector.extract_strided_slice %15 {offsets = [24, 0], sizes = [8, 32], strides = [1, 1]} : vector<32x32xf32> to vector<8x32xf32>
    %cst_29 = arith.constant dense<0.000000e+00> : vector<8x32xf32>
    %91 = tpu.matmul %89, %90, %cst_29 {dimension_numbers = #tpu.dot_dimension_numbers<[1], [0], [0], [1], [0, 0, 1, 1], [], []>} : vector<8x8xf32>, vector<8x32xf32>, vector<8x32xf32> -> vector<8x32xf32>
    %92 = arith.addf %73, %91 : vector<8x32xf32>
    %c0_30 = arith.constant 0 : index
    %c0_31 = arith.constant 0 : index
    %93 = vector.load %arg5[%c0_30, %c0_31] : memref<1x32xf32, #tpu.memory_space<vmem>>, vector<1x32xf32>
    %94 = vector.broadcast %93 : vector<1x32xf32> to vector<8x32xf32>
    %95 = arith.addf %92, %94 : vector<8x32xf32>
    %96 = vector.shape_cast %95 : vector<8x32xf32> to vector<1x8x32xf32>
    %c0_32 = arith.constant 0 : index
    %c0_33 = arith.constant 0 : index
    %c0_34 = arith.constant 0 : index
    %97 = vector.load %arg6[%c0_32, %c0_33, %c0_34] : memref<1x8x32xf32, #tpu.memory_space<vmem>>, vector<1x8x32xf32>
    tpu.vector_store %arg6[%c0_32, %c0_33, %c0_34], %96 {strides = array<i32>} : memref<1x8x32xf32, #tpu.memory_space<vmem>>, vector<1x8x32xf32>,
    return
  }
  func.func @transform_0(%arg0: i32) -> (i32, i32, i32) {
    %c0_i32 = arith.constant 0 : i32
    %c0_i32_0 = arith.constant 0 : i32
    %c0_i32_1 = arith.constant 0 : i32
    return %arg0, %c0_i32, %c0_i32_0 : i32, i32, i32
  }
  func.func @transform_1(%arg0: i32) -> (i32, i32) {
    %c0_i32 = arith.constant 0 : i32
    %c0_i32_0 = arith.constant 0 : i32
    %c0_i32_1 = arith.constant 0 : i32
    return %c0_i32, %c0_i32_0 : i32, i32
  }
  func.func @transform_2(%arg0: i32) -> (i32, i32) {
    %c0_i32 = arith.constant 0 : i32
    %c0_i32_0 = arith.constant 0 : i32
    %c0_i32_1 = arith.constant 0 : i32
    return %c0_i32, %c0_i32_0 : i32, i32
  }
  func.func @transform_3(%arg0: i32) -> (i32, i32) {
    %c0_i32 = arith.constant 0 : i32
    %c0_i32_0 = arith.constant 0 : i32
    %c0_i32_1 = arith.constant 0 : i32
    return %c0_i32, %c0_i32_0 : i32, i32
  }
  func.func @transform_4(%arg0: i32) -> (i32, i32) {
    %c0_i32 = arith.constant 0 : i32
    %c0_i32_0 = arith.constant 0 : i32
    %c0_i32_1 = arith.constant 0 : i32
    return %c0_i32, %c0_i32_0 : i32, i32
  }
  func.func @transform_5(%arg0: i32) -> (i32, i32, i32) {
    %c0_i32 = arith.constant 0 : i32
    %c0_i32_0 = arith.constant 0 : i32
    %c0_i32_1 = arith.constant 0 : i32
    return %arg0, %c0_i32, %c0_i32_0 : i32, i32, i32
  }
}

module attributes {stable_mosaic.version = 11 : i64} {
  func.func @mhsa_kernel(%arg0: i32, %arg1: memref<1x8x32xf32, #tpu.memory_space<vmem>>, %arg2: memref<32x96xf32, #tpu.memory_space<vmem>>, %arg3: memref<1x96xf32, #tpu.memory_space<vmem>>, %arg4: memref<32x32xf32, #tpu.memory_space<vmem>>, %arg5: memref<1x32xf32, #tpu.memory_space<vmem>>, %arg6: memref<1x8x32xf32, #tpu.memory_space<vmem>>) attributes {dimension_semantics = [#tpu.dimension_semantics<parallel>], iteration_bounds = array<i64: 2>, scalar_prefetch = 0 : i64, scratch_operands = 0 : i64, tpu.core_type = #tpu.core_type<tc>, window_params = [{transform_indices = @transform_0, window_bounds = array<i64: 1, 8, 32>}, {pipeline_mode = #tpu.pipeline_mode<synchronous>, transform_indices = @transform_1, window_bounds = array<i64: 32, 96>}, {pipeline_mode = #tpu.pipeline_mode<synchronous>, transform_indices = @transform_2, window_bounds = array<i64: 1, 96>}, {pipeline_mode = #tpu.pipeline_mode<synchronous>, transform_indices = @transform_3, window_bounds = array<i64: 32, 32>}, {pipeline_mode = #tpu.pipeline_mode<synchronous>, transform_indices = @transform_4, window_bounds = array<i64: 1, 32>}, {transform_indices = @transform_5, window_bounds = array<i64: 1, 8, 32>}]} {
    %c0 = arith.constant 0 : index
    %c0_0 = arith.constant 0 : index
    %c0_1 = arith.constant 0 : index
    %0 = vector.load %arg1[%c0, %c0_0, %c0_1] : memref<1x8x32xf32, #tpu.memory_space<vmem>>, vector<1x8x32xf32>
    %1 = vector.shape_cast %0 : vector<1x8x32xf32> to vector<8x32xf32>
    %c0_2 = arith.constant 0 : index
    %c0_3 = arith.constant 0 : index
    %2 = vector.load %arg2[%c0_2, %c0_3] : memref<32x96xf32, #tpu.memory_space<vmem>>, vector<32x96xf32>
    %cst = arith.constant dense<0.000000e+00> : vector<8x96xf32>
    %3 = tpu.matmul %1, %2, %cst {dimension_numbers = #tpu.dot_dimension_numbers<[1], [0], [0], [1], [0, 0, 1, 1], [], []>} : vector<8x32xf32>, vector<32x96xf32>, vector<8x96xf32> -> vector<8x96xf32>
    %c0_4 = arith.constant 0 : index
    %c0_5 = arith.constant 0 : index
    %4 = vector.load %arg3[%c0_4, %c0_5] : memref<1x96xf32, #tpu.memory_space<vmem>>, vector<1x96xf32>
    %5 = vector.broadcast %4 : vector<1x96xf32> to vector<8x96xf32>
    %6 = arith.addf %3, %5 : vector<8x96xf32>
    %7 = vector.extract_strided_slice %6 {offsets = [0, 0], sizes = [8, 32], strides = [1, 1]} : vector<8x96xf32> to vector<8x32xf32>
    %cst_6 = arith.constant 0.353553385 : f32
    %8 = vector.broadcast %cst_6 : f32 to vector<8x32xf32>
    %9 = arith.mulf %7, %8 : vector<8x32xf32>
    %10 = vector.shape_cast %9 : vector<8x32xf32> to vector<1x8x32xf32>
    %11 = vector.extract_strided_slice %6 {offsets = [0, 32], sizes = [8, 32], strides = [1, 1]} : vector<8x96xf32> to vector<8x32xf32>
    %12 = vector.shape_cast %11 : vector<8x32xf32> to vector<1x8x32xf32>
    %13 = vector.extract_strided_slice %6 {offsets = [0, 64], sizes = [8, 32], strides = [1, 1]} : vector<8x96xf32> to vector<8x32xf32>
    %14 = vector.shape_cast %13 : vector<8x32xf32> to vector<1x8x32xf32>
    %c0_7 = arith.constant 0 : index
    %c0_8 = arith.constant 0 : index
    %15 = vector.load %arg4[%c0_7, %c0_8] : memref<32x32xf32, #tpu.memory_space<vmem>>, vector<32x32xf32>
    %cst_9 = arith.constant 0.000000e+00 : f32
    %16 = vector.broadcast %cst_9 : f32 to vector<8x32xf32>
    %17 = vector.extract_strided_slice %10 {offsets = [0, 0, 0], sizes = [1, 8, 8], strides = [1, 1, 1]} : vector<1x8x32xf32> to vector<1x8x8xf32>
    %18 = vector.extract_strided_slice %12 {offsets = [0, 0, 0], sizes = [1, 8, 8], strides = [1, 1, 1]} : vector<1x8x32xf32> to vector<1x8x8xf32>
    %19 = vector.extract_strided_slice %14 {offsets = [0, 0, 0], sizes = [1, 8, 8], strides = [1, 1, 1]} : vector<1x8x32xf32> to vector<1x8x8xf32>
    "tpu.trace_start"() <{level = 10 : i32, message = "bnd,bmd->bnm"}> : () -> ()
    %cst_10 = arith.constant dense<0.000000e+00> : vector<1x8x8xf32>
    %20 = tpu.matmul %17, %18, %cst_10 {dimension_numbers = #tpu.dot_dimension_numbers<[2], [2], [1], [1], [0, 0, 0, 1, 1, 1], [0], [0]>} : vector<1x8x8xf32>, vector<1x8x8xf32>, vector<1x8x8xf32> -> vector<1x8x8xf32>
    "tpu.trace_stop"() : () -> ()
    %cst_11 = arith.constant dense<0xFF800000> : vector<1x8xf32>
    %21 = vector.multi_reduction <maximumf>, %20, %cst_11 [2] : vector<1x8x8xf32> to vector<1x8xf32>
    %22 = vector.shape_cast %21 : vector<1x8xf32> to vector<1x8x1xf32>
    %23 = vector.broadcast %22 : vector<1x8x1xf32> to vector<1x8x8xf32>
    %24 = arith.subf %20, %23 : vector<1x8x8xf32>
    %25 = math.exp %24 : vector<1x8x8xf32>
    %cst_12 = arith.constant dense<0.000000e+00> : vector<1x8xf32>
    %26 = vector.multi_reduction <add>, %25, %cst_12 [2] : vector<1x8x8xf32> to vector<1x8xf32>
    %27 = vector.shape_cast %26 : vector<1x8xf32> to vector<1x8x1xf32>
    %28 = tpu.reciprocal %27 {approx = true} : vector<1x8x1xf32> -> vector<1x8x1xf32>
    %29 = vector.broadcast %28 : vector<1x8x1xf32> to vector<1x8x8xf32>
    %30 = arith.mulf %25, %29 : vector<1x8x8xf32>
    "tpu.trace_start"() <{level = 10 : i32, message = "bnm,bmd->bnd"}> : () -> ()
    %cst_13 = arith.constant dense<0.000000e+00> : vector<1x8x8xf32>
    %31 = tpu.matmul %30, %19, %cst_13 {dimension_numbers = #tpu.dot_dimension_numbers<[2], [1], [1], [2], [0, 0, 0, 1, 1, 2], [0], [0]>} : vector<1x8x8xf32>, vector<1x8x8xf32>, vector<1x8x8xf32> -> vector<1x8x8xf32>
    "tpu.trace_stop"() : () -> ()
    %32 = vector.shape_cast %31 : vector<1x8x8xf32> to vector<8x8xf32>
    %33 = vector.extract_strided_slice %15 {offsets = [0, 0], sizes = [8, 32], strides = [1, 1]} : vector<32x32xf32> to vector<8x32xf32>
    %cst_14 = arith.constant dense<0.000000e+00> : vector<8x32xf32>
    %34 = tpu.matmul %32, %33, %cst_14 {dimension_numbers = #tpu.dot_dimension_numbers<[1], [0], [0], [1], [0, 0, 1, 1], [], []>} : vector<8x8xf32>, vector<8x32xf32>, vector<8x32xf32> -> vector<8x32xf32>
    %35 = arith.addf %16, %34 : vector<8x32xf32>
    %36 = vector.extract_strided_slice %10 {offsets = [0, 0, 8], sizes = [1, 8, 8], strides = [1, 1, 1]} : vector<1x8x32xf32> to vector<1x8x8xf32>
    %37 = vector.extract_strided_slice %12 {offsets = [0, 0, 8], sizes = [1, 8, 8], strides = [1, 1, 1]} : vector<1x8x32xf32> to vector<1x8x8xf32>
    %38 = vector.extract_strided_slice %14 {offsets = [0, 0, 8], sizes = [1, 8, 8], strides = [1, 1, 1]} : vector<1x8x32xf32> to vector<1x8x8xf32>
    "tpu.trace_start"() <{level = 10 : i32, message = "bnd,bmd->bnm"}> : () -> ()
    %cst_15 = arith.constant dense<0.000000e+00> : vector<1x8x8xf32>
    %39 = tpu.matmul %36, %37, %cst_15 {dimension_numbers = #tpu.dot_dimension_numbers<[2], [2], [1], [1], [0, 0, 0, 1, 1, 1], [0], [0]>} : vector<1x8x8xf32>, vector<1x8x8xf32>, vector<1x8x8xf32> -> vector<1x8x8xf32>
    "tpu.trace_stop"() : () -> ()
    %cst_16 = arith.constant dense<0xFF800000> : vector<1x8xf32>
    %40 = vector.multi_reduction <maximumf>, %39, %cst_16 [2] : vector<1x8x8xf32> to vector<1x8xf32>
    %41 = vector.shape_cast %40 : vector<1x8xf32> to vector<1x8x1xf32>
    %42 = vector.broadcast %41 : vector<1x8x1xf32> to vector<1x8x8xf32>
    %43 = arith.subf %39, %42 : vector<1x8x8xf32>
    %44 = math.exp %43 : vector<1x8x8xf32>
    %cst_17 = arith.constant dense<0.000000e+00> : vector<1x8xf32>
    %45 = vector.multi_reduction <add>, %44, %cst_17 [2] : vector<1x8x8xf32> to vector<1x8xf32>
    %46 = vector.shape_cast %45 : vector<1x8xf32> to vector<1x8x1xf32>
    %47 = tpu.reciprocal %46 {approx = true} : vector<1x8x1xf32> -> vector<1x8x1xf32>
    %48 = vector.broadcast %47 : vector<1x8x1xf32> to vector<1x8x8xf32>
    %49 = arith.mulf %44, %48 : vector<1x8x8xf32>
    "tpu.trace_start"() <{level = 10 : i32, message = "bnm,bmd->bnd"}> : () -> ()
    %cst_18 = arith.constant dense<0.000000e+00> : vector<1x8x8xf32>
    %50 = tpu.matmul %49, %38, %cst_18 {dimension_numbers = #tpu.dot_dimension_numbers<[2], [1], [1], [2], [0, 0, 0, 1, 1, 2], [0], [0]>} : vector<1x8x8xf32>, vector<1x8x8xf32>, vector<1x8x8xf32> -> vector<1x8x8xf32>
    "tpu.trace_stop"() : () -> ()
    %51 = vector.shape_cast %50 : vector<1x8x8xf32> to vector<8x8xf32>
    %52 = vector.extract_strided_slice %15 {offsets = [8, 0], sizes = [8, 32], strides = [1, 1]} : vector<32x32xf32> to vector<8x32xf32>
    %cst_19 = arith.constant dense<0.000000e+00> : vector<8x32xf32>
    %53 = tpu.matmul %51, %52, %cst_19 {dimension_numbers = #tpu.dot_dimension_numbers<[1], [0], [0], [1], [0, 0, 1, 1], [], []>} : vector<8x8xf32>, vector<8x32xf32>, vector<8x32xf32> -> vector<8x32xf32>
    %54 = arith.addf %35, %53 : vector<8x32xf32>
    %55 = vector.extract_strided_slice %10 {offsets = [0, 0, 16], sizes = [1, 8, 8], strides = [1, 1, 1]} : vector<1x8x32xf32> to vector<1x8x8xf32>
    %56 = vector.extract_strided_slice %12 {offsets = [0, 0, 16], sizes = [1, 8, 8], strides = [1, 1, 1]} : vector<1x8x32xf32> to vector<1x8x8xf32>
    %57 = vector.extract_strided_slice %14 {offsets = [0, 0, 16], sizes = [1, 8, 8], strides = [1, 1, 1]} : vector<1x8x32xf32> to vector<1x8x8xf32>
    "tpu.trace_start"() <{level = 10 : i32, message = "bnd,bmd->bnm"}> : () -> ()
    %cst_20 = arith.constant dense<0.000000e+00> : vector<1x8x8xf32>
    %58 = tpu.matmul %55, %56, %cst_20 {dimension_numbers = #tpu.dot_dimension_numbers<[2], [2], [1], [1], [0, 0, 0, 1, 1, 1], [0], [0]>} : vector<1x8x8xf32>, vector<1x8x8xf32>, vector<1x8x8xf32> -> vector<1x8x8xf32>
    "tpu.trace_stop"() : () -> ()
    %cst_21 = arith.constant dense<0xFF800000> : vector<1x8xf32>
    %59 = vector.multi_reduction <maximumf>, %58, %cst_21 [2] : vector<1x8x8xf32> to vector<1x8xf32>
    %60 = vector.shape_cast %59 : vector<1x8xf32> to vector<1x8x1xf32>
    %61 = vector.broadcast %60 : vector<1x8x1xf32> to vector<1x8x8xf32>
    %62 = arith.subf %58, %61 : vector<1x8x8xf32>
    %63 = math.exp %62 : vector<1x8x8xf32>
    %cst_22 = arith.constant dense<0.000000e+00> : vector<1x8xf32>
    %64 = vector.multi_reduction <add>, %63, %cst_22 [2] : vector<1x8x8xf32> to vector<1x8xf32>
    %65 = vector.shape_cast %64 : vector<1x8xf32> to vector<1x8x1xf32>
    %66 = tpu.reciprocal %65 {approx = true} : vector<1x8x1xf32> -> vector<1x8x1xf32>
    %67 = vector.broadcast %66 : vector<1x8x1xf32> to vector<1x8x8xf32>
    %68 = arith.mulf %63, %67 : vector<1x8x8xf32>
    "tpu.trace_start"() <{level = 10 : i32, message = "bnm,bmd->bnd"}> : () -> ()
    %cst_23 = arith.constant dense<0.000000e+00> : vector<1x8x8xf32>
    %69 = tpu.matmul %68, %57, %cst_23 {dimension_numbers = #tpu.dot_dimension_numbers<[2], [1], [1], [2], [0, 0, 0, 1, 1, 2], [0], [0]>} : vector<1x8x8xf32>, vector<1x8x8xf32>, vector<1x8x8xf32> -> vector<1x8x8xf32>
    "tpu.trace_stop"() : () -> ()
    %70 = vector.shape_cast %69 : vector<1x8x8xf32> to vector<8x8xf32>
    %71 = vector.extract_strided_slice %15 {offsets = [16, 0], sizes = [8, 32], strides = [1, 1]} : vector<32x32xf32> to vector<8x32xf32>
    %cst_24 = arith.constant dense<0.000000e+00> : vector<8x32xf32>
    %72 = tpu.matmul %70, %71, %cst_24 {dimension_numbers = #tpu.dot_dimension_numbers<[1], [0], [0], [1], [0, 0, 1, 1], [], []>} : vector<8x8xf32>, vector<8x32xf32>, vector<8x32xf32> -> vector<8x32xf32>
    %73 = arith.addf %54, %72 : vector<8x32xf32>
    %74 = vector.extract_strided_slice %10 {offsets = [0, 0, 24], sizes = [1, 8, 8], strides = [1, 1, 1]} : vector<1x8x32xf32> to vector<1x8x8xf32>
    %75 = vector.extract_strided_slice %12 {offsets = [0, 0, 24], sizes = [1, 8, 8], strides = [1, 1, 1]} : vector<1x8x32xf32> to vector<1x8x8xf32>
    %76 = vector.extract_strided_slice %14 {offsets = [0, 0, 24], sizes = [1, 8, 8], strides = [1, 1, 1]} : vector<1x8x32xf32> to vector<1x8x8xf32>
    "tpu.trace_start"() <{level = 10 : i32, message = "bnd,bmd->bnm"}> : () -> ()
    %cst_25 = arith.constant dense<0.000000e+00> : vector<1x8x8xf32>
    %77 = tpu.matmul %74, %75, %cst_25 {dimension_numbers = #tpu.dot_dimension_numbers<[2], [2], [1], [1], [0, 0, 0, 1, 1, 1], [0], [0]>} : vector<1x8x8xf32>, vector<1x8x8xf32>, vector<1x8x8xf32> -> vector<1x8x8xf32>
    "tpu.trace_stop"() : () -> ()
    %cst_26 = arith.constant dense<0xFF800000> : vector<1x8xf32>
    %78 = vector.multi_reduction <maximumf>, %77, %cst_26 [2] : vector<1x8x8xf32> to vector<1x8xf32>
    %79 = vector.shape_cast %78 : vector<1x8xf32> to vector<1x8x1xf32>
    %80 = vector.broadcast %79 : vector<1x8x1xf32> to vector<1x8x8xf32>
    %81 = arith.subf %77, %80 : vector<1x8x8xf32>
    %82 = math.exp %81 : vector<1x8x8xf32>
    %cst_27 = arith.constant dense<0.000000e+00> : vector<1x8xf32>
    %83 = vector.multi_reduction <add>, %82, %cst_27 [2] : vector<1x8x8xf32> to vector<1x8xf32>
    %84 = vector.shape_cast %83 : vector<1x8xf32> to vector<1x8x1xf32>
    %85 = tpu.reciprocal %84 {approx = true} : vector<1x8x1xf32> -> vector<1x8x1xf32>
    %86 = vector.broadcast %85 : vector<1x8x1xf32> to vector<1x8x8xf32>
    %87 = arith.mulf %82, %86 : vector<1x8x8xf32>
    "tpu.trace_start"() <{level = 10 : i32, message = "bnm,bmd->bnd"}> : () -> ()
    %cst_28 = arith.constant dense<0.000000e+00> : vector<1x8x8xf32>
    %88 = tpu.matmul %87, %76, %cst_28 {dimension_numbers = #tpu.dot_dimension_numbers<[2], [1], [1], [2], [0, 0, 0, 1, 1, 2], [0], [0]>} : vector<1x8x8xf32>, vector<1x8x8xf32>, vector<1x8x8xf32> -> vector<1x8x8xf32>
    "tpu.trace_stop"() : () -> ()
    %89 = vector.shape_cast %88 : vector<1x8x8xf32> to vector<8x8xf32>
    %90 = vector.extract_strided_slice %15 {offsets = [24, 0], sizes = [8, 32], strides = [1, 1]} : vector<32x32xf32> to vector<8x32xf32>
    %cst_29 = arith.constant dense<0.000000e+00> : vector<8x32xf32>
    %91 = tpu.matmul %89, %90, %cst_29 {dimension_numbers = #tpu.dot_dimension_numbers<[1], [0], [0], [1], [0, 0, 1, 1], [], []>} : vector<8x8xf32>, vector<8x32xf32>, vector<8x32xf32> -> vector<8x32xf32>
    %92 = arith.addf %73, %91 : vector<8x32xf32>
    %c0_30 = arith.constant 0 : index
    %c0_31 = arith.constant 0 : index
    %93 = vector.load %arg5[%c0_30, %c0_31] : memref<1x32xf32, #tpu.memory_space<vmem>>, vector<1x32xf32>
    %94 = vector.broadcast %93 : vector<1x32xf32> to vector<8x32xf32>
    %95 = arith.addf %92, %94 : vector<8x32xf32>
    %96 = vector.shape_cast %95 : vector<8x32xf32> to vector<1x8x32xf32>
    %c0_32 = arith.constant 0 : index
    %c0_33 = arith.constant 0 : index
    %c0_34 = arith.constant 0 : index
    %97 = vector.load %arg6[%c0_32, %c0_33, %c0_34] : memref<1x8x32xf32, #tpu.memory_space<vmem>>, vector<1x8x32xf32>
    tpu.vector_store %arg6[%c0_32, %c0_33, %c0_34], %96 {strides = array<i32>} : memref<1x8x32xf32, #tpu.memory_space<vmem>>, vector<1x8x32xf32>,
    return
  }
  func.func @transform_0(%arg0: i32) -> (i32, i32, i32) {
    %c0_i32 = arith.constant 0 : i32
    %c0_i32_0 = arith.constant 0 : i32
    %c0_i32_1 = arith.constant 0 : i32
    return %arg0, %c0_i32, %c0_i32_0 : i32, i32, i32
  }
  func.func @transform_1(%arg0: i32) -> (i32, i32) {
    %c0_i32 = arith.constant 0 : i32
    %c0_i32_0 = arith.constant 0 : i32
    %c0_i32_1 = arith.constant 0 : i32
    return %c0_i32, %c0_i32_0 : i32, i32
  }
  func.func @transform_2(%arg0: i32) -> (i32, i32) {
    %c0_i32 = arith.constant 0 : i32
    %c0_i32_0 = arith.constant 0 : i32
    %c0_i32_1 = arith.constant 0 : i32
    return %c0_i32, %c0_i32_0 : i32, i32
  }
  func.func @transform_3(%arg0: i32) -> (i32, i32) {
    %c0_i32 = arith.constant 0 : i32
    %c0_i32_0 = arith.constant 0 : i32
    %c0_i32_1 = arith.constant 0 : i32
    return %c0_i32, %c0_i32_0 : i32, i32
  }
  func.func @transform_4(%arg0: i32) -> (i32, i32) {
    %c0_i32 = arith.constant 0 : i32
    %c0_i32_0 = arith.constant 0 : i32
    %c0_i32_1 = arith.constant 0 : i32
    return %c0_i32, %c0_i32_0 : i32, i32
  }
  func.func @transform_5(%arg0: i32) -> (i32, i32, i32) {
    %c0_i32 = arith.constant 0 : i32
    %c0_i32_0 = arith.constant 0 : i32
    %c0_i32_1 = arith.constant 0 : i32
    return %arg0, %c0_i32, %c0_i32_0 : i32, i32, i32
  }
}

</mosaic_0001>

<bundles_post_ra>
// kernel: tpu_custom_call.1
= control target key start
LH: loop header
LB: loop body
LE: loop exit
PB: predicated region body
PF: predicated region fallthrough
CT: control target
= control target key end

     0   :  { %10 = vsyncpa [#allocation3], 0  ;;  %s1312_s0 = inlined_call_operand.hbm [shape: f32[2,8,32], index: 0, kind: input, shape index: {}]   ;;  %s1313_s1 = inlined_call_operand.hbm [shape: f32[32,96], index: 1, kind: input, shape index: {}]   ;;  %s1314_s2 = inlined_call_operand.vmem [shape: f32[1,96], index: 2, kind: input, shape index: {}]   ;;  %s1315_s3 = inlined_call_operand.hbm [shape: f32[32,32], index: 3, kind: input, shape index: {}]   ;;  %s1316_s4 = inlined_call_operand.vmem [shape: f32[1,32], index: 4, kind: input, shape index: {}]   ;;  %s1317_s5 = inlined_call_operand.hbm [shape: f32[2,8,32], index: 5, kind: output, shape index: {}]  }
   0x1   :  { %12 = vsyncpa [#allocation3 + $0x1], 0 }
   0x2   :  { %13 = vsyncpa [#allocation6], 0 }
   0x3   :  { %14 = vsyncpa [#allocation4], 0 }
   0x4   :  { %16 = vsyncpa [#allocation4 + $0x1], 0  ;;  %s1117_s18 = smov 0   ;;  %s1119_s19 = smov 0  }
   0x5   :  { %s1121_s20 = smov 0   ;;  %s1123_s21 = smov 0  }
   0x6 LB: > { %s174_s24 = sshll.u32 %s1313_s1, 4  ;;  %s1141_s25 = sadd.s32 4294967295, %s1070_s21   ;;  %s1070_s21 = sphi %s1123_s21, %s1328_s21   ;;  %s1066_s20 = sphi %s1121_s20, %s1327_s20   ;;  %s1062_s19 = sphi %s1119_s19, %s1326_s19   ;;  %s1058_s18 = sphi %s1117_s18, %s1325_s18   ;;  %s175_s24 = int_to_ptr.hbm [resolvable:$true] %s174_s24 }
   0x7   : > { %p780_p0 = scmp.ge.s32.totalorder %s1070_s21, 1  ;;  %p43_p1 = scmp.eq.s32.totalorder %s1141_s25, 0 }
   0x8   : > { %p163_p2 = scmp.lt.s32.totalorder %s1070_s21, 3  ;;  %s1072_s27 = smov [#allocation5]  }
   0x9   : > { %s176_s28 = sshll.u32 %s1072_s27, 4  ;;  %s191_s6 = sshll.u32 %s1315_s3, 4  ;;  %s177_s28 = int_to_ptr.vmem [resolvable:$true] %s176_s28  ;;  %s192_s6 = int_to_ptr.hbm [resolvable:$true] %s191_s6 }
   0xa   : > { %p1146_p3 = pnand %p780_p0, %p163_p2  ;;  %s1073_s7 = smov [#allocation7]  }
   0xb   : > { %s193_s8 = sshll.u32 %s1073_s7, 4  ;;  %s1074_s9 = smov 128   ;;  %s194_s8 = int_to_ptr.vmem [resolvable:$true] %s193_s8 }
   0xc   : > { %p824_p4 = pneg %p1146_p3  ;;  %s1075_s10 = smov 8  }
   0xd   : > { %s779_s11 = sadd.s32 4294967294, %s1070_s21   ;;  %s1160_s12 = sadd.s32 1, %s1070_s21  }
   0xe   : > { %p825_p6 = pnand %p824_p4, %p43_p1  ;;  %s26_s13 = ssub.s32 %s1070_s21, %s1160_s12 }
   0xf   : > { %s29_s14 = sadd.s32 1, %s1066_s20  ;;  %p27_p7 = scmp.eq.s32.totalorder %s26_s13, 0 }
  0x10   : > { %827 = dma.hbm_to_vmem [thread:$0]  (!%p825_p6), %s175_s24, 512, %s177_s28, [#allocation6], %s1074_s9, %s1074_s9, %s1075_s10  }
  0x11   : > { %830 = dma.hbm_to_vmem [thread:$0]  (!%p825_p6), %s192_s6, 512, %s194_s8, [#allocation6], %s1074_s9, %s1074_s9, %s1075_s10  }
  0x12   : > { %p36_p8 = scmp.ne.s32.totalorder %s1066_s20, %s1062_s19  ;;  %p37_p9 = scmp.eq.s32.totalorder %s1070_s21, 0 }
  0x13   : > { %p42_p10 = scmp.ne.s32.totalorder %s1062_s19, %s1058_s18  ;;  %p150_p13 = scmp.eq.s32.totalorder %s1141_s25, 1 }
  0x14   : > { %s1171_s15 = scalar_select %p27_p7, %s1066_s20, %s29_s14  }
  0x15   : > { %p1173_p11 = por %p37_p9, %p36_p8  ;;  %p1179_p12 = por %p43_p1, %p42_p10 }
  0x16   : > { %p156_p0 = scmp.eq.s32.totalorder %s779_s11, 1  ;;  %p841_p2 = scmp.lt.s32.totalorder %s1070_s21, 2 }
  0x17   : > { %s210_s22 = sand.u32 1, %s1066_s20   ;;  %p1186_p4 = por %p150_p13, %p36_p8 }
  0x18   : > { %p1190_p6 = por %p156_p0, %p42_p10  ;;  %s784_s27 = sshll.u32 %s210_s22, 3 }
  0x19   : > { %s785_s28 = sshll.u32 %s1070_s21, 3  ;;  %s214_s7 = scalar_lea.vmem [#allocation2], %s784_s27 }
  0x1a   : > { %s218_s6 = scalar_lea.hbm %s1312_s0, %s785_s28  ;;  %s222_s8 = sshll.u32 %s214_s7, 4  ;;  %s223_s8 = int_to_ptr.vmem [resolvable:$true] %s222_s8 }
  0x1b   : > { %s220_s9 = sshll.u32 %s218_s6, 4  ;;  %p1200_p7 = pnand %p841_p2, %p1173_p11  ;;  %s221_s9 = int_to_ptr.hbm [resolvable:$true] %s220_s9 }
  0x1c   : > { %s211_s11 = scalar_lea.sflag [#allocation3], %s210_s22  ;;  %s970_s13 = sshra.s32 %s221_s9, 4  ;;  %s971_s13 = int_to_ptr.hbm [resolvable:$true] %s970_s13 }
  0x1d   : > { %s972_s14 = scalar_lea.hbm %s971_s13, 8  ;;  %p974_p9 = pneg %p1200_p7 }
  0x1e   : > { %p973_p8 = scmp.ne.s32.totalorder %s971_s13, %s972_s14  ;;  %s977_s29 = scalar_lea.hbm %s1312_s0, 16 }
  0x1f   : > { %p978_p11 = scmp.lt.s32.totalorder %s971_s13, %s1312_s0  ;;  %p979_p0 = scmp.lt.s32.totalorder %s977_s29, %s972_s14 }
  0x20   : > { %p975_p10 = pnand %p974_p9, %p973_p8 }
  0x21   : > { %p980_p2 = por %p979_p0, %p978_p11 }
  0x22   : > { %p976_p13 = pneg %p975_p10 }
  0x24   : > { %p981_p5 = pnand %p980_p2, %p976_p13 }
  0x26   : > { %984 = shalt.err (!%p981_p5)
}
  0x27   : > { %834 = dma.hbm_to_vmem [thread:$0]  (!%p1200_p7), %s221_s9, 128, %s223_s8, %s211_s11  }
  0x28   : > { %231 = sbr.rel (%p1146_p3) target bundleno = 1489 (0x5d1), region = 40  ;;  %s1217_s22 = sand.u32 (!%p1146_p3), 1, %s1062_s19  }
  0x29   : > { %s787_s6 = sshll.u32 (!%p1146_p3), %s1217_s22, 3  ;;  %s234_s7 = scalar_lea.sflag (!%p1146_p3), [#allocation3], %s1217_s22 }
  0x2a   : > { %s237_s13 = scalar_lea.vmem (!%p1146_p3), [#allocation2], %s787_s6 }
  0x2d   : > { %1045 = dma.done.wait (%p1179_p12), %s234_s7, 128  }
  0x2e   : > { %1047 = vsyncadd (%p1179_p12), %s234_s7, 4294967168 }
  0x2f   : > { %1049 = dma.done.wait (%p43_p1), [#allocation6], 1024  }
  0x30   : > { %1051 = vsyncadd (%p43_p1), [#allocation6], 4294966272  ;;  %v279_v0 = vld [vmem:[#allocation5 + $0x18] sm:$0xff]  ;;  %v278_v1 = vld [vmem:[#allocation5 + $0x10] sm:$0xff]  ;;  %vm284_vm0 = vcmask 261120   ;;  %s1076_s8 = smov 88  }
  0x31   : > { %300 = vmatpush.msra.mxu0 %v279_v0  ;;  %v277_v2 = vld [vmem:[#allocation5 + $0x8] sm:$0xff]  ;;  %v276_v3 = vld [vmem:[#allocation5] sm:$0xff]  ;;  %v275_v4 = vld [vmem:[%s237_s13] sm:$0xff]  ;;  %s1077_s9 = smov 96   ;;  %s1078_s10 = smov 120   ;;  %vm316_vm1 = vcmask 64512  }
  0x32   : > { %v892_v5 = vld [vmem:[%s1314_s2] ss:$0 sm:$0xff]  ;;  %s1079_s11 = smov 72   ;;  %s1080_s14 = smov 104   ;;  %v309_v9 = vld [vmem:[#allocation7] sm:$0xff]  ;;  %v310_v63 = vld [vmem:[#allocation7 + $0x8] sm:$0xff] }
  0x33   : > { %301 = vmatpush.msra.mxu0 %v278_v1  ;;  %s1081_s27 = smov 80   ;;  %s1082_s28 = smov 64   ;;  %v311_v0 = vld [vmem:[#allocation7 + $0x10] sm:$0xff] }
  0x34   : > { %s1083_s29 = smov 112   ;;  %s1084_s30 = smov 48  }
  0x35   : > { %302 = vmatpush.msra.mxu0 %v277_v2  ;;  %s1085_s16 = smov 56   ;;  %s1086_s7 = smov 40  }
  0x36   : > { %s809_s13 = sshll.u32 %s1141_s25, 3  ;;  %s675_s25 = scalar_lea.sflag [#allocation4], %s1217_s22 }
  0x37   : > { %303 = vmatpush.msra.mxu0 %v276_v3  ;;  %v312_v3 = vld [vmem:[#allocation7 + $0x18] sm:$0xff] }
  0x38   : > { %791 = vmatmul.msk.f32.vlgmr.msra.gmra.mxu0 %vm284_vm0, %v275_v4 }
  0xb5   : > { %v305_v6 = vpop.f32.mrf.mxu0 }
  0xb6   : > { %v1235_v7 = vadd.f32 %v892_v5, %v305_v6 }
  0xb8   : > { %381 = vrot.lane.b32.xlu2 %v1235_v7, %s1076_s8  ;;  %314 = vrot.lane.b32.xlu0 %v1235_v7, %s1077_s9  ;;  %v308_v8 = vmul.f32 0.35355338, %v1235_v7  ;;  %s685_s8 = scalar_lea.hbm %s1317_s5, %s809_s13 }
  0xc0   : > { %379 = vrot.lane.b32.xlu2 %v308_v8, %s1078_s10 }
  0xc8   : > { %581 = vrot.lane.b32.xlu2 %v1235_v7, %s1079_s11  ;;  %s274_s11 = scalar_lea.vmem [#allocation8], %s787_s6  ;;  %s1020_s6 = scalar_lea.hbm %s1317_s5, 16 }
  0xd0   : > { %579 = vrot.lane.b32.xlu2 %v308_v8, %s1080_s14  ;;  %s687_s14 = sshll.u32 %s274_s11, 4  ;;  %s688_s14 = int_to_ptr.vmem [resolvable:$true] %s687_s14 }
  0xd8   : > { %492 = vrot.lane.b32.xlu2 %v1235_v7, %s1081_s27  ;;  %s689_s27 = sshll.u32 %s685_s8, 4  ;;  %s690_s27 = int_to_ptr.hbm [resolvable:$true] %s689_s27 }
 0x112   : > { %v382_v10 = vpop.permute.xlu2 %381 }
 0x113   : > { %795 = vmatpush.xpose.msk.msra.mxu3 %vm316_vm1, %v382_v10 }
 0x117   : > { %485 = vmatpush.msrb.mxu3 %v309_v9  ;;  %v893_v9 = vld [vmem:[%s1316_s4] ss:$0 sm:$0xff] }
 0x11a   : > { %v380_v11 = vpop.permute.xlu2 %379 }
 0x11b   : > { %796 = vmatmul.msk.f32.vlgmr.msra.gmra.mxu3 %vm316_vm1, %v380_v11 }
 0x122   : > { %v582_v12 = vpop.permute.xlu2 %581 }
 0x123   : > { %804 = vmatpush.xpose.msk.msra.mxu3 %vm316_vm1, %v582_v12 }
 0x12a   : > { %v315_v13 = vpop.permute.xlu0 %314  ;;  %v580_v14 = vpop.permute.xlu2 %579 }
 0x12b   : > { %792 = vmatpush.xpose.msk.msra.mxu1 %vm316_vm1, %v315_v13 }
 0x12e   : > { %793 = vmatmul.msk.f32.vlgmr.msra.gmra.mxu1 %vm316_vm1, %v308_v8 }
 0x12f   : > { %462 = vmatpush.msrb.mxu1 %v310_v63 }
 0x131   : > { %573 = vmatpush.msra.mxu1 %v311_v0 }
 0x132   : > { %v493_v15 = vpop.permute.xlu2 %492 }
 0x133   : > { %800 = vmatpush.xpose.msk.msrb.mxu0 %vm316_vm1, %v493_v15 }
 0x19e   : > { %v404_v16 = vpop.f32.mrf.mxu3 }
 0x19f   : > { %v407_v17 = vsel %vm316_vm1, %v404_v16, -inf }
 0x1a0   : > { %408 = vmax.xlane.f32.xlu2 %v407_v17 }
 0x1ab   : > { %v339_v18 = vpop.f32.mrf.mxu1 }
 0x1ac   : > { %v342_v19 = vsel %vm316_vm1, %v339_v18, -inf }
 0x1ad   : > { %343 = vmax.xlane.f32.xlu0 %v342_v19 }
 0x213   : > { %v409_v33 = vpop.xlane.xlu2 %408 }
 0x214   : > { %v410_v34 = vsub.f32 %v404_v16, %v409_v33 }
 0x216   : > { %v411_v36 = vmul.f32 1.442695, %v410_v34 }
 0x220   : > { %v344_v20 = vpop.xlane.xlu0 %343 }
 0x221   : > { %v345_v21 = vsub.f32 %v339_v18, %v344_v20 }
 0x223   : > { %v346_v22 = vmul.f32 1.442695, %v345_v21 }
 0x225   : > { %894 = vpow2.f32 %v346_v22 }
 0x22b   : > { %v895_v23 = vpop.eup %894 }
 0x22c   : > { %v348_v24 = vsel %vm316_vm1, %v895_v23, 0.0 }
 0x22d   : > { %349 = vadd.xlane.f32.xlu1 %v348_v24 }
 0x246   : > { %353 = vrot.lane.b32.xlu1 %v1235_v7, %s1082_s28  ;;  %s1014_s28 = sshra.s32 %s690_s27, 4  ;;  %s1015_s28 = int_to_ptr.hbm [resolvable:$true] %s1014_s28 }
 0x247   : > { %p1021_p12 = scmp.lt.s32.totalorder %s1015_s28, %s1317_s5 }
 0x24e   : > { %490 = vrot.lane.b32.xlu1 %v308_v8, %s1083_s29  ;;  %s1016_s29 = scalar_lea.hbm %s1015_s28, 8 }
 0x24f   : > { %p1017_p1 = scmp.ne.s32.totalorder %s1015_s28, %s1016_s29  ;;  %p1022_p7 = scmp.lt.s32.totalorder %s1020_s6, %s1016_s29 }
 0x251   : > { %p1018_p3 = pnand %p1017_p1, %p1186_p4  ;;  %p1023_p8 = por %p1022_p7, %p1021_p12 }
 0x253   : > { %p1019_p5 = pneg %p1018_p3 }
 0x255   : > { %p1024_p9 = pnand %p1023_p8, %p1019_p5 }
 0x2a0   : > { %v350_v25 = vpop.xlane.xlu1 %349 }
 0x2a1   : > { %896 = vrcp.f32 %v350_v25 }
 0x2a2   : > { %898 = vpow2.f32 %v411_v36 }
 0x2a7   : > { %v897_v26 = vpop.eup %896 }
 0x2a8   : > { %v352_v28 = vmul.f32 %v897_v26, %v895_v23  ;;  %v899_v42 = vpop.eup %898 }
 0x2a9   : > { %v413_v43 = vsel %vm316_vm1, %v899_v42, 0.0 }
 0x2b8   : > { %v354_v27 = vpop.permute.xlu1 %353 }
 0x2b9   : > { %374 = vmatpush.msra.mxu2 %v354_v27 }
 0x2ba   : > { %794 = vmatmul.msk.f32.vlgmr.msra.gmra.mxu2 %vm316_vm1, %v352_v28 }
 0x2c0   : > { %v491_v29 = vpop.permute.xlu1 %490 }
 0x2c1   : > { %801 = vmatmul.msk.f32.vlgmr.msrb.gmra.mxu0 %vm316_vm1, %v491_v29 }
 0x33d   : > { %v376_v30 = vpop.f32.mrf.mxu2 }
 0x33e   : > { %799 = vmatmul.msk.f32.vlgmr.msrb.gmra.mxu3 %vm316_vm1, %v376_v30  ;;  %v515_v31 = vpop.f32.mrf.mxu0 }
 0x33f   : > { %v518_v32 = vsel %vm316_vm1, %v515_v31, -inf }
 0x340   : > { %519 = vmax.xlane.f32.xlu1 %v518_v32 }
 0x346   : > { %805 = vmatmul.msk.f32.vlgmr.msra.gmra.mxu3 %vm316_vm1, %v580_v14 }
 0x359   : > { %529 = vrot.lane.b32.xlu1 %v1235_v7, %s1084_s30 }
 0x3b3   : > { %v520_v37 = vpop.xlane.xlu1 %519 }
 0x3b4   : > { %v521_v38 = vsub.f32 %v515_v31, %v520_v37 }
 0x3b6   : > { %v522_v41 = vmul.f32 1.442695, %v521_v38 }
 0x3b8   : > { %900 = vpow2.f32 %v522_v41 }
 0x3be   : > { %v901_v44 = vpop.eup %900 }
 0x3bf   : > { %v524_v45 = vsel %vm316_vm1, %v901_v44, 0.0 }
 0x3c1   : > { %v1258_v35 = vpop.f32.mrf.mxu3 }
 0x3c9   : > { %v604_v39 = vpop.f32.mrf.mxu3 }
 0x3ca   : > { %v607_v40 = vsel %vm316_vm1, %v604_v39, -inf }
 0x3cb   : > { %608 = vmax.xlane.f32.xlu0 %v607_v40  ;;  %v530_v56 = vpop.permute.xlu1 %529 }
 0x3d3   : > { %414 = vadd.xlane.f32.xlu0 %v413_v43 }
 0x3db   : > { %525 = vadd.xlane.f32.xlu0 %v524_v45 }
 0x3ef   : > { %418 = vrot.lane.b32.xlu0 %v1235_v7, %s1085_s16 }
 0x43e   : > { %v609_v46 = vpop.xlane.xlu0 %608 }
 0x43f   : > { %v610_v47 = vsub.f32 %v604_v39, %v609_v46 }
 0x441   : > { %v611_v48 = vmul.f32 1.442695, %v610_v47 }
 0x443   : > { %902 = vpow2.f32 %v611_v48 }
 0x446   : > { %v415_v51 = vpop.xlane.xlu0 %414 }
 0x447   : > { %904 = vrcp.f32 %v415_v51 }
 0x449   : > { %v903_v49 = vpop.eup %902 }
 0x44a   : > { %v613_v50 = vsel %vm316_vm1, %v903_v49, 0.0 }
 0x44b   : > { %614 = vadd.xlane.f32.xlu2 %v613_v50 }
 0x44d   : > { %v905_v53 = vpop.eup %904 }
 0x44e   : > { %v526_v52 = vpop.xlane.xlu0 %525  ;;  %v417_v55 = vmul.f32 %v905_v53, %v899_v42 }
 0x44f   : > { %906 = vrcp.f32 %v526_v52 }
 0x455   : > { %v907_v57 = vpop.eup %906 }
 0x456   : > { %v528_v58 = vmul.f32 %v907_v57, %v901_v44 }
 0x461   : > { %v419_v54 = vpop.permute.xlu0 %418 }
 0x462   : > { %439 = vmatpush.msrb.mxu2 %v419_v54 }
 0x463   : > { %618 = vrot.lane.b32.xlu2 %v1235_v7, %s1086_s7  ;;  %797 = vmatmul.msk.f32.vlgmr.msrb.gmra.mxu2 %vm316_vm1, %v417_v55 }
 0x464   : > { %550 = vmatpush.msra.mxu2 %v530_v56 }
 0x466   : > { %662 = vmatpush.msrb.mxu2 %v312_v3 }
 0x46b   : > { %802 = vmatmul.msk.f32.vlgmr.msra.gmra.mxu2 %vm316_vm1, %v528_v58 }
 0x4be   : > { %v615_v59 = vpop.xlane.xlu2 %614 }
 0x4bf   : > { %908 = vrcp.f32 %v615_v59 }
 0x4c5   : > { %v909_v60 = vpop.eup %908 }
 0x4c6   : > { %v617_v61 = vmul.f32 %v909_v60, %v903_v49  ;;  %v619_v62 = vpop.permute.xlu2 %618 }
 0x4c7   : > { %639 = vmatpush.msra.mxu0 %v619_v62 }
 0x4c8   : > { %806 = vmatmul.msk.f32.vlgmr.msra.gmra.mxu0 %vm316_vm1, %v617_v61 }
 0x4e6   : > { %v441_v1 = vpop.f32.mrf.mxu2 }
 0x4e7   : > { %798 = vmatmul.msk.f32.vlgmr.msrb.gmra.mxu1 %vm316_vm1, %v441_v1 }
 0x4ee   : > { %v552_v2 = vpop.f32.mrf.mxu2 }
 0x4ef   : > { %803 = vmatmul.msk.f32.vlgmr.msra.gmra.mxu1 %vm316_vm1, %v552_v2 }
 0x545   : > { %v641_v4 = vpop.f32.mrf.mxu0 }
 0x546   : > { %807 = vmatmul.msk.f32.vlgmr.msrb.gmra.mxu2 %vm316_vm1, %v641_v4 }
 0x564   : > { %v464_v5 = vpop.f32.mrf.mxu1 }
 0x565   : > { %v488_v7 = vadd.f32 %v1258_v35, %v464_v5 }
 0x56c   : > { %v575_v6 = vpop.f32.mrf.mxu1 }
 0x56d   : > { %v578_v8 = vadd.f32 %v575_v6, %v488_v7 }
 0x5c9   : > { %v664_v10 = vpop.f32.mrf.mxu2 }
 0x5ca   : > { %v667_v11 = vadd.f32 %v664_v10, %v578_v8 }
 0x5cc   : > { %v672_v12 = vadd.f32 %v893_v9, %v667_v11 }
 0x5ce   : > { %673 = vst.msk [vmem:[%s274_s11] sm:$0xff] %vm284_vm0, %v672_v12 }
 0x5cf   : > { %1027 = shalt.err (!%p1024_p9)
}
 0x5d0   : > { %822 = dma.vmem_to_hbm [thread:$0]  (%p1186_p4), %s688_s14, 128, %s690_s27, %s675_s25  }
 0x5d1 PF: > { %s701_s22 = sand.u32 1, %s1058_s18   ;;  %p1324_p10 = scmp.ge.s32.totalorder %s1070_s21, 2 }
 0x5d2   : > { %s702_s26 = scalar_lea.sflag [#allocation4], %s701_s22 }
 0x5d3   : > { %p836_p13 = pnand %p1324_p10, %p1190_p6 }
 0x5d5   : > { %p837_p11 = pneg %p836_p13 }
 0x5d7   : > { %1053 = dma.done.wait (%p837_p11), %s702_s26, 128  }
 0x5d8   : > { %1055 = vsyncadd (%p837_p11), %s702_s26, 4294967168  ;;  %p19_p0 = scmp.ge.s32.totalorder %s1160_s12, 4   ;;  %s1325_s18 = smov %s1062_s19 }
 0x5d9   : > { %s1326_s19 = smov %s1066_s20  ;;  %s1327_s20 = smov %s1171_s15 }
 0x5da   : > { %s1328_s21 = smov %s1160_s12  ;;  %21 = sbr.rel (!%p19_p0) target bundleno = 6 (0x6), region = 93 }
 0x5df   :  { %708 = vsyncpa [#allocation3], 1 }
 0x5e0   :  { %710 = vsyncpa [#allocation3 + $0x1], 1 }
 0x5e1   :  { %711 = vsyncpa [#allocation6], 1 }
 0x5e2   :  { %712 = vsyncpa [#allocation4], 1 }
 0x5e3   :  { %714 = vsyncpa [#allocation4 + $0x1], 1 }

// kernel: tpu_custom_call.1
= control target key start
LH: loop header
LB: loop body
LE: loop exit
PB: predicated region body
PF: predicated region fallthrough
CT: control target
= control target key end

     0   :  { %10 = vsyncpa [#allocation3], 0  ;;  %s1312_s0 = inlined_call_operand.hbm [shape: f32[2,8,32], index: 0, kind: input, shape index: {}]   ;;  %s1313_s1 = inlined_call_operand.hbm [shape: f32[32,96], index: 1, kind: input, shape index: {}]   ;;  %s1314_s2 = inlined_call_operand.vmem [shape: f32[1,96], index: 2, kind: input, shape index: {}]   ;;  %s1315_s3 = inlined_call_operand.hbm [shape: f32[32,32], index: 3, kind: input, shape index: {}]   ;;  %s1316_s4 = inlined_call_operand.vmem [shape: f32[1,32], index: 4, kind: input, shape index: {}]   ;;  %s1317_s5 = inlined_call_operand.hbm [shape: f32[2,8,32], index: 5, kind: output, shape index: {}]  }
   0x1   :  { %12 = vsyncpa [#allocation3 + $0x1], 0 }
   0x2   :  { %13 = vsyncpa [#allocation6], 0 }
   0x3   :  { %14 = vsyncpa [#allocation4], 0 }
   0x4   :  { %16 = vsyncpa [#allocation4 + $0x1], 0  ;;  %s1117_s18 = smov 0   ;;  %s1119_s19 = smov 0  }
   0x5   :  { %s1121_s20 = smov 0   ;;  %s1123_s21 = smov 0  }
   0x6 LB: > { %s174_s24 = sshll.u32 %s1313_s1, 4  ;;  %s1141_s25 = sadd.s32 4294967295, %s1070_s21   ;;  %s1070_s21 = sphi %s1123_s21, %s1328_s21   ;;  %s1066_s20 = sphi %s1121_s20, %s1327_s20   ;;  %s1062_s19 = sphi %s1119_s19, %s1326_s19   ;;  %s1058_s18 = sphi %s1117_s18, %s1325_s18   ;;  %s175_s24 = int_to_ptr.hbm [resolvable:$true] %s174_s24 }
   0x7   : > { %p780_p0 = scmp.ge.s32.totalorder %s1070_s21, 1  ;;  %p43_p1 = scmp.eq.s32.totalorder %s1141_s25, 0 }
   0x8   : > { %p163_p2 = scmp.lt.s32.totalorder %s1070_s21, 3  ;;  %s1072_s27 = smov [#allocation5]  }
   0x9   : > { %s176_s28 = sshll.u32 %s1072_s27, 4  ;;  %s191_s6 = sshll.u32 %s1315_s3, 4  ;;  %s177_s28 = int_to_ptr.vmem [resolvable:$true] %s176_s28  ;;  %s192_s6 = int_to_ptr.hbm [resolvable:$true] %s191_s6 }
   0xa   : > { %p1146_p3 = pnand %p780_p0, %p163_p2  ;;  %s1073_s7 = smov [#allocation7]  }
   0xb   : > { %s193_s8 = sshll.u32 %s1073_s7, 4  ;;  %s1074_s9 = smov 128   ;;  %s194_s8 = int_to_ptr.vmem [resolvable:$true] %s193_s8 }
   0xc   : > { %p824_p4 = pneg %p1146_p3  ;;  %s1075_s10 = smov 8  }
   0xd   : > { %s779_s11 = sadd.s32 4294967294, %s1070_s21   ;;  %s1160_s12 = sadd.s32 1, %s1070_s21  }
   0xe   : > { %p825_p6 = pnand %p824_p4, %p43_p1  ;;  %s26_s13 = ssub.s32 %s1070_s21, %s1160_s12 }
   0xf   : > { %s29_s14 = sadd.s32 1, %s1066_s20  ;;  %p27_p7 = scmp.eq.s32.totalorder %s26_s13, 0 }
  0x10   : > { %827 = dma.hbm_to_vmem [thread:$0]  (!%p825_p6), %s175_s24, 512, %s177_s28, [#allocation6], %s1074_s9, %s1074_s9, %s1075_s10  }
  0x11   : > { %830 = dma.hbm_to_vmem [thread:$0]  (!%p825_p6), %s192_s6, 512, %s194_s8, [#allocation6], %s1074_s9, %s1074_s9, %s1075_s10  }
  0x12   : > { %p36_p8 = scmp.ne.s32.totalorder %s1066_s20, %s1062_s19  ;;  %p37_p9 = scmp.eq.s32.totalorder %s1070_s21, 0 }
  0x13   : > { %p42_p10 = scmp.ne.s32.totalorder %s1062_s19, %s1058_s18  ;;  %p150_p13 = scmp.eq.s32.totalorder %s1141_s25, 1 }
  0x14   : > { %s1171_s15 = scalar_select %p27_p7, %s1066_s20, %s29_s14  }
  0x15   : > { %p1173_p11 = por %p37_p9, %p36_p8  ;;  %p1179_p12 = por %p43_p1, %p42_p10 }
  0x16   : > { %p156_p0 = scmp.eq.s32.totalorder %s779_s11, 1  ;;  %p841_p2 = scmp.lt.s32.totalorder %s1070_s21, 2 }
  0x17   : > { %s210_s22 = sand.u32 1, %s1066_s20   ;;  %p1186_p4 = por %p150_p13, %p36_p8 }
  0x18   : > { %p1190_p6 = por %p156_p0, %p42_p10  ;;  %s784_s27 = sshll.u32 %s210_s22, 3 }
  0x19   : > { %s785_s28 = sshll.u32 %s1070_s21, 3  ;;  %s214_s7 = scalar_lea.vmem [#allocation2], %s784_s27 }
  0x1a   : > { %s218_s6 = scalar_lea.hbm %s1312_s0, %s785_s28  ;;  %s222_s8 = sshll.u32 %s214_s7, 4  ;;  %s223_s8 = int_to_ptr.vmem [resolvable:$true] %s222_s8 }
  0x1b   : > { %s220_s9 = sshll.u32 %s218_s6, 4  ;;  %p1200_p7 = pnand %p841_p2, %p1173_p11  ;;  %s221_s9 = int_to_ptr.hbm [resolvable:$true] %s220_s9 }
  0x1c   : > { %s211_s11 = scalar_lea.sflag [#allocation3], %s210_s22  ;;  %s970_s13 = sshra.s32 %s221_s9, 4  ;;  %s971_s13 = int_to_ptr.hbm [resolvable:$true] %s970_s13 }
  0x1d   : > { %s972_s14 = scalar_lea.hbm %s971_s13, 8  ;;  %p974_p9 = pneg %p1200_p7 }
  0x1e   : > { %p973_p8 = scmp.ne.s32.totalorder %s971_s13, %s972_s14  ;;  %s977_s29 = scalar_lea.hbm %s1312_s0, 16 }
  0x1f   : > { %p978_p11 = scmp.lt.s32.totalorder %s971_s13, %s1312_s0  ;;  %p979_p0 = scmp.lt.s32.totalorder %s977_s29, %s972_s14 }
  0x20   : > { %p975_p10 = pnand %p974_p9, %p973_p8 }
  0x21   : > { %p980_p2 = por %p979_p0, %p978_p11 }
  0x22   : > { %p976_p13 = pneg %p975_p10 }
  0x24   : > { %p981_p5 = pnand %p980_p2, %p976_p13 }
  0x26   : > { %984 = shalt.err (!%p981_p5)
}
  0x27   : > { %834 = dma.hbm_to_vmem [thread:$0]  (!%p1200_p7), %s221_s9, 128, %s223_s8, %s211_s11  }
  0x28   : > { %231 = sbr.rel (%p1146_p3) target bundleno = 1489 (0x5d1), region = 40  ;;  %s1217_s22 = sand.u32 (!%p1146_p3), 1, %s1062_s19  }
  0x29   : > { %s787_s6 = sshll.u32 (!%p1146_p3), %s1217_s22, 3  ;;  %s234_s7 = scalar_lea.sflag (!%p1146_p3), [#allocation3], %s1217_s22 }
  0x2a   : > { %s237_s13 = scalar_lea.vmem (!%p1146_p3), [#allocation2], %s787_s6 }
  0x2d   : > { %1045 = dma.done.wait (%p1179_p12), %s234_s7, 128  }
  0x2e   : > { %1047 = vsyncadd (%p1179_p12), %s234_s7, 4294967168 }
  0x2f   : > { %1049 = dma.done.wait (%p43_p1), [#allocation6], 1024  }
  0x30   : > { %1051 = vsyncadd (%p43_p1), [#allocation6], 4294966272  ;;  %v279_v0 = vld [vmem:[#allocation5 + $0x18] sm:$0xff]  ;;  %v278_v1 = vld [vmem:[#allocation5 + $0x10] sm:$0xff]  ;;  %vm284_vm0 = vcmask 261120   ;;  %s1076_s8 = smov 88  }
  0x31   : > { %300 = vmatpush.msra.mxu0 %v279_v0  ;;  %v277_v2 = vld [vmem:[#allocation5 + $0x8] sm:$0xff]  ;;  %v276_v3 = vld [vmem:[#allocation5] sm:$0xff]  ;;  %v275_v4 = vld [vmem:[%s237_s13] sm:$0xff]  ;;  %s1077_s9 = smov 96   ;;  %s1078_s10 = smov 120   ;;  %vm316_vm1 = vcmask 64512  }
  0x32   : > { %v892_v5 = vld [vmem:[%s1314_s2] ss:$0 sm:$0xff]  ;;  %s1079_s11 = smov 72   ;;  %s1080_s14 = smov 104   ;;  %v309_v9 = vld [vmem:[#allocation7] sm:$0xff]  ;;  %v310_v63 = vld [vmem:[#allocation7 + $0x8] sm:$0xff] }
  0x33   : > { %301 = vmatpush.msra.mxu0 %v278_v1  ;;  %s1081_s27 = smov 80   ;;  %s1082_s28 = smov 64   ;;  %v311_v0 = vld [vmem:[#allocation7 + $0x10] sm:$0xff] }
  0x34   : > { %s1083_s29 = smov 112   ;;  %s1084_s30 = smov 48  }
  0x35   : > { %302 = vmatpush.msra.mxu0 %v277_v2  ;;  %s1085_s16 = smov 56   ;;  %s1086_s7 = smov 40  }
  0x36   : > { %s809_s13 = sshll.u32 %s1141_s25, 3  ;;  %s675_s25 = scalar_lea.sflag [#allocation4], %s1217_s22 }
  0x37   : > { %303 = vmatpush.msra.mxu0 %v276_v3  ;;  %v312_v3 = vld [vmem:[#allocation7 + $0x18] sm:$0xff] }
  0x38   : > { %791 = vmatmul.msk.f32.vlgmr.msra.gmra.mxu0 %vm284_vm0, %v275_v4 }
  0xb5   : > { %v305_v6 = vpop.f32.mrf.mxu0 }
  0xb6   : > { %v1235_v7 = vadd.f32 %v892_v5, %v305_v6 }
  0xb8   : > { %381 = vrot.lane.b32.xlu2 %v1235_v7, %s1076_s8  ;;  %314 = vrot.lane.b32.xlu0 %v1235_v7, %s1077_s9  ;;  %v308_v8 = vmul.f32 0.35355338, %v1235_v7  ;;  %s685_s8 = scalar_lea.hbm %s1317_s5, %s809_s13 }
  0xc0   : > { %379 = vrot.lane.b32.xlu2 %v308_v8, %s1078_s10 }
  0xc8   : > { %581 = vrot.lane.b32.xlu2 %v1235_v7, %s1079_s11  ;;  %s274_s11 = scalar_lea.vmem [#allocation8], %s787_s6  ;;  %s1020_s6 = scalar_lea.hbm %s1317_s5, 16 }
  0xd0   : > { %579 = vrot.lane.b32.xlu2 %v308_v8, %s1080_s14  ;;  %s687_s14 = sshll.u32 %s274_s11, 4  ;;  %s688_s14 = int_to_ptr.vmem [resolvable:$true] %s687_s14 }
  0xd8   : > { %492 = vrot.lane.b32.xlu2 %v1235_v7, %s1081_s27  ;;  %s689_s27 = sshll.u32 %s685_s8, 4  ;;  %s690_s27 = int_to_ptr.hbm [resolvable:$true] %s689_s27 }
 0x112   : > { %v382_v10 = vpop.permute.xlu2 %381 }
 0x113   : > { %795 = vmatpush.xpose.msk.msra.mxu3 %vm316_vm1, %v382_v10 }
 0x117   : > { %485 = vmatpush.msrb.mxu3 %v309_v9  ;;  %v893_v9 = vld [vmem:[%s1316_s4] ss:$0 sm:$0xff] }
 0x11a   : > { %v380_v11 = vpop.permute.xlu2 %379 }
 0x11b   : > { %796 = vmatmul.msk.f32.vlgmr.msra.gmra.mxu3 %vm316_vm1, %v380_v11 }
 0x122   : > { %v582_v12 = vpop.permute.xlu2 %581 }
 0x123   : > { %804 = vmatpush.xpose.msk.msra.mxu3 %vm316_vm1, %v582_v12 }
 0x12a   : > { %v315_v13 = vpop.permute.xlu0 %314  ;;  %v580_v14 = vpop.permute.xlu2 %579 }
 0x12b   : > { %792 = vmatpush.xpose.msk.msra.mxu1 %vm316_vm1, %v315_v13 }
 0x12e   : > { %793 = vmatmul.msk.f32.vlgmr.msra.gmra.mxu1 %vm316_vm1, %v308_v8 }
 0x12f   : > { %462 = vmatpush.msrb.mxu1 %v310_v63 }
 0x131   : > { %573 = vmatpush.msra.mxu1 %v311_v0 }
 0x132   : > { %v493_v15 = vpop.permute.xlu2 %492 }
 0x133   : > { %800 = vmatpush.xpose.msk.msrb.mxu0 %vm316_vm1, %v493_v15 }
 0x19e   : > { %v404_v16 = vpop.f32.mrf.mxu3 }
 0x19f   : > { %v407_v17 = vsel %vm316_vm1, %v404_v16, -inf }
 0x1a0   : > { %408 = vmax.xlane.f32.xlu2 %v407_v17 }
 0x1ab   : > { %v339_v18 = vpop.f32.mrf.mxu1 }
 0x1ac   : > { %v342_v19 = vsel %vm316_vm1, %v339_v18, -inf }
 0x1ad   : > { %343 = vmax.xlane.f32.xlu0 %v342_v19 }
 0x213   : > { %v409_v33 = vpop.xlane.xlu2 %408 }
 0x214   : > { %v410_v34 = vsub.f32 %v404_v16, %v409_v33 }
 0x216   : > { %v411_v36 = vmul.f32 1.442695, %v410_v34 }
 0x220   : > { %v344_v20 = vpop.xlane.xlu0 %343 }
 0x221   : > { %v345_v21 = vsub.f32 %v339_v18, %v344_v20 }
 0x223   : > { %v346_v22 = vmul.f32 1.442695, %v345_v21 }
 0x225   : > { %894 = vpow2.f32 %v346_v22 }
 0x22b   : > { %v895_v23 = vpop.eup %894 }
 0x22c   : > { %v348_v24 = vsel %vm316_vm1, %v895_v23, 0.0 }
 0x22d   : > { %349 = vadd.xlane.f32.xlu1 %v348_v24 }
 0x246   : > { %353 = vrot.lane.b32.xlu1 %v1235_v7, %s1082_s28  ;;  %s1014_s28 = sshra.s32 %s690_s27, 4  ;;  %s1015_s28 = int_to_ptr.hbm [resolvable:$true] %s1014_s28 }
 0x247   : > { %p1021_p12 = scmp.lt.s32.totalorder %s1015_s28, %s1317_s5 }
 0x24e   : > { %490 = vrot.lane.b32.xlu1 %v308_v8, %s1083_s29  ;;  %s1016_s29 = scalar_lea.hbm %s1015_s28, 8 }
 0x24f   : > { %p1017_p1 = scmp.ne.s32.totalorder %s1015_s28, %s1016_s29  ;;  %p1022_p7 = scmp.lt.s32.totalorder %s1020_s6, %s1016_s29 }
 0x251   : > { %p1018_p3 = pnand %p1017_p1, %p1186_p4  ;;  %p1023_p8 = por %p1022_p7, %p1021_p12 }
 0x253   : > { %p1019_p5 = pneg %p1018_p3 }
 0x255   : > { %p1024_p9 = pnand %p1023_p8, %p1019_p5 }
 0x2a0   : > { %v350_v25 = vpop.xlane.xlu1 %349 }
 0x2a1   : > { %896 = vrcp.f32 %v350_v25 }
 0x2a2   : > { %898 = vpow2.f32 %v411_v36 }
 0x2a7   : > { %v897_v26 = vpop.eup %896 }
 0x2a8   : > { %v352_v28 = vmul.f32 %v897_v26, %v895_v23  ;;  %v899_v42 = vpop.eup %898 }
 0x2a9   : > { %v413_v43 = vsel %vm316_vm1, %v899_v42, 0.0 }
 0x2b8   : > { %v354_v27 = vpop.permute.xlu1 %353 }
 0x2b9   : > { %374 = vmatpush.msra.mxu2 %v354_v27 }
 0x2ba   : > { %794 = vmatmul.msk.f32.vlgmr.msra.gmra.mxu2 %vm316_vm1, %v352_v28 }
 0x2c0   : > { %v491_v29 = vpop.permute.xlu1 %490 }
 0x2c1   : > { %801 = vmatmul.msk.f32.vlgmr.msrb.gmra.mxu0 %vm316_vm1, %v491_v29 }
 0x33d   : > { %v376_v30 = vpop.f32.mrf.mxu2 }
 0x33e   : > { %799 = vmatmul.msk.f32.vlgmr.msrb.gmra.mxu3 %vm316_vm1, %v376_v30  ;;  %v515_v31 = vpop.f32.mrf.mxu0 }
 0x33f   : > { %v518_v32 = vsel %vm316_vm1, %v515_v31, -inf }
 0x340   : > { %519 = vmax.xlane.f32.xlu1 %v518_v32 }
 0x346   : > { %805 = vmatmul.msk.f32.vlgmr.msra.gmra.mxu3 %vm316_vm1, %v580_v14 }
 0x359   : > { %529 = vrot.lane.b32.xlu1 %v1235_v7, %s1084_s30 }
 0x3b3   : > { %v520_v37 = vpop.xlane.xlu1 %519 }
 0x3b4   : > { %v521_v38 = vsub.f32 %v515_v31, %v520_v37 }
 0x3b6   : > { %v522_v41 = vmul.f32 1.442695, %v521_v38 }
 0x3b8   : > { %900 = vpow2.f32 %v522_v41 }
 0x3be   : > { %v901_v44 = vpop.eup %900 }
 0x3bf   : > { %v524_v45 = vsel %vm316_vm1, %v901_v44, 0.0 }
 0x3c1   : > { %v1258_v35 = vpop.f32.mrf.mxu3 }
 0x3c9   : > { %v604_v39 = vpop.f32.mrf.mxu3 }
 0x3ca   : > { %v607_v40 = vsel %vm316_vm1, %v604_v39, -inf }
 0x3cb   : > { %608 = vmax.xlane.f32.xlu0 %v607_v40  ;;  %v530_v56 = vpop.permute.xlu1 %529 }
 0x3d3   : > { %414 = vadd.xlane.f32.xlu0 %v413_v43 }
 0x3db   : > { %525 = vadd.xlane.f32.xlu0 %v524_v45 }
 0x3ef   : > { %418 = vrot.lane.b32.xlu0 %v1235_v7, %s1085_s16 }
 0x43e   : > { %v609_v46 = vpop.xlane.xlu0 %608 }
 0x43f   : > { %v610_v47 = vsub.f32 %v604_v39, %v609_v46 }
 0x441   : > { %v611_v48 = vmul.f32 1.442695, %v610_v47 }
 0x443   : > { %902 = vpow2.f32 %v611_v48 }
 0x446   : > { %v415_v51 = vpop.xlane.xlu0 %414 }
 0x447   : > { %904 = vrcp.f32 %v415_v51 }
 0x449   : > { %v903_v49 = vpop.eup %902 }
 0x44a   : > { %v613_v50 = vsel %vm316_vm1, %v903_v49, 0.0 }
 0x44b   : > { %614 = vadd.xlane.f32.xlu2 %v613_v50 }
 0x44d   : > { %v905_v53 = vpop.eup %904 }
 0x44e   : > { %v526_v52 = vpop.xlane.xlu0 %525  ;;  %v417_v55 = vmul.f32 %v905_v53, %v899_v42 }
 0x44f   : > { %906 = vrcp.f32 %v526_v52 }
 0x455   : > { %v907_v57 = vpop.eup %906 }
 0x456   : > { %v528_v58 = vmul.f32 %v907_v57, %v901_v44 }
 0x461   : > { %v419_v54 = vpop.permute.xlu0 %418 }
 0x462   : > { %439 = vmatpush.msrb.mxu2 %v419_v54 }
 0x463   : > { %618 = vrot.lane.b32.xlu2 %v1235_v7, %s1086_s7  ;;  %797 = vmatmul.msk.f32.vlgmr.msrb.gmra.mxu2 %vm316_vm1, %v417_v55 }
 0x464   : > { %550 = vmatpush.msra.mxu2 %v530_v56 }
 0x466   : > { %662 = vmatpush.msrb.mxu2 %v312_v3 }
 0x46b   : > { %802 = vmatmul.msk.f32.vlgmr.msra.gmra.mxu2 %vm316_vm1, %v528_v58 }
 0x4be   : > { %v615_v59 = vpop.xlane.xlu2 %614 }
 0x4bf   : > { %908 = vrcp.f32 %v615_v59 }
 0x4c5   : > { %v909_v60 = vpop.eup %908 }
 0x4c6   : > { %v617_v61 = vmul.f32 %v909_v60, %v903_v49  ;;  %v619_v62 = vpop.permute.xlu2 %618 }
 0x4c7   : > { %639 = vmatpush.msra.mxu0 %v619_v62 }
 0x4c8   : > { %806 = vmatmul.msk.f32.vlgmr.msra.gmra.mxu0 %vm316_vm1, %v617_v61 }
 0x4e6   : > { %v441_v1 = vpop.f32.mrf.mxu2 }
 0x4e7   : > { %798 = vmatmul.msk.f32.vlgmr.msrb.gmra.mxu1 %vm316_vm1, %v441_v1 }
 0x4ee   : > { %v552_v2 = vpop.f32.mrf.mxu2 }
 0x4ef   : > { %803 = vmatmul.msk.f32.vlgmr.msra.gmra.mxu1 %vm316_vm1, %v552_v2 }
 0x545   : > { %v641_v4 = vpop.f32.mrf.mxu0 }
 0x546   : > { %807 = vmatmul.msk.f32.vlgmr.msrb.gmra.mxu2 %vm316_vm1, %v641_v4 }
 0x564   : > { %v464_v5 = vpop.f32.mrf.mxu1 }
 0x565   : > { %v488_v7 = vadd.f32 %v1258_v35, %v464_v5 }
 0x56c   : > { %v575_v6 = vpop.f32.mrf.mxu1 }
 0x56d   : > { %v578_v8 = vadd.f32 %v575_v6, %v488_v7 }
 0x5c9   : > { %v664_v10 = vpop.f32.mrf.mxu2 }
 0x5ca   : > { %v667_v11 = vadd.f32 %v664_v10, %v578_v8 }
 0x5cc   : > { %v672_v12 = vadd.f32 %v893_v9, %v667_v11 }
 0x5ce   : > { %673 = vst.msk [vmem:[%s274_s11] sm:$0xff] %vm284_vm0, %v672_v12 }
 0x5cf   : > { %1027 = shalt.err (!%p1024_p9)
}
 0x5d0   : > { %822 = dma.vmem_to_hbm [thread:$0]  (%p1186_p4), %s688_s14, 128, %s690_s27, %s675_s25  }
 0x5d1 PF: > { %s701_s22 = sand.u32 1, %s1058_s18   ;;  %p1324_p10 = scmp.ge.s32.totalorder %s1070_s21, 2 }
 0x5d2   : > { %s702_s26 = scalar_lea.sflag [#allocation4], %s701_s22 }
 0x5d3   : > { %p836_p13 = pnand %p1324_p10, %p1190_p6 }
 0x5d5   : > { %p837_p11 = pneg %p836_p13 }
 0x5d7   : > { %1053 = dma.done.wait (%p837_p11), %s702_s26, 128  }
 0x5d8   : > { %1055 = vsyncadd (%p837_p11), %s702_s26, 4294967168  ;;  %p19_p0 = scmp.ge.s32.totalorder %s1160_s12, 4   ;;  %s1325_s18 = smov %s1062_s19 }
 0x5d9   : > { %s1326_s19 = smov %s1066_s20  ;;  %s1327_s20 = smov %s1171_s15 }
 0x5da   : > { %s1328_s21 = smov %s1160_s12  ;;  %21 = sbr.rel (!%p19_p0) target bundleno = 6 (0x6), region = 93 }
 0x5df   :  { %708 = vsyncpa [#allocation3], 1 }
 0x5e0   :  { %710 = vsyncpa [#allocation3 + $0x1], 1 }
 0x5e1   :  { %711 = vsyncpa [#allocation6], 1 }
 0x5e2   :  { %712 = vsyncpa [#allocation4], 1 }
 0x5e3   :  { %714 = vsyncpa [#allocation4 + $0x1], 1 }

</bundles_post_ra>
